<compile_context>
chip_gen: v7x
topology: tpu7x:2x2x1
jax: 0.10.0
libtpu: 0.0.40
codegen_flags: <defaults>
</compile_context>

<pallas_src>
import math

import numpy as np
import jax
import jax.numpy as jnp
from jax.experimental import pallas as pl
from jax.experimental.pallas import tpu as pltpu


# ----------------------------------------------------------------------------
# Diffusion schedule buffers (setup glue, computed in float64 numpy like torch)
# ----------------------------------------------------------------------------
def sigmoid_beta_schedule(timesteps, start=-3, end=3, tau=1):
    steps = timesteps + 1
    t = np.linspace(0, timesteps, steps, dtype=np.float64) / timesteps
    sigmoid = lambda z: 1.0 / (1.0 + np.exp(-z))
    v_start = sigmoid(start / tau)
    v_end = sigmoid(end / tau)
    alphas_cumprod = (-sigmoid((t * (end - start) + start) / tau) + v_end) / (v_end - v_start)
    alphas_cumprod = alphas_cumprod / alphas_cumprod[0]
    betas = 1.0 - alphas_cumprod[1:] / alphas_cumprod[:-1]
    return np.clip(betas, 0.0, 0.999)


def make_diffusion_buffers(timesteps=1000):
    betas = sigmoid_beta_schedule(timesteps)
    alphas = 1.0 - betas
    alphas_cumprod = np.cumprod(alphas, axis=0)
    # objective == 'pred_noise', min_snr_loss_weight == False -> weight = snr/snr = 1
    # (use ones directly to avoid the inf/inf hazard when alphas_cumprod -> 1).
    loss_weight = np.ones_like(alphas_cumprod)
    return dict(
        sqrt_alphas_cumprod=jnp.asarray(np.sqrt(alphas_cumprod), jnp.float32),
        sqrt_one_minus_alphas_cumprod=jnp.asarray(np.sqrt(1.0 - alphas_cumprod), jnp.float32),
        loss_weight=jnp.asarray(loss_weight, jnp.float32),
    )


# ----------------------------------------------------------------------------
# Pallas kernel: q_sample + mask-select + 1x1-conv denoiser (VPU) + masked MSE
# Grid = (B, S // TS); one (C, TS) spatial tile per step.
# ----------------------------------------------------------------------------
def _diffusion_loss_kernel(coef_ref, x0_ref, nz_ref, ctx_ref, mask_ref,
                           bias_ref, w1t_ref, w2t_ref, out_ref, acc_ref):
    # coef  : (3*B,)      f32  SMEM   [a_b, sqrt(1-a)_b, loss_weight_b/(C*H*W)] per b
    # x0/ctx: (1, C, TS)  bf16 VMEM   (lane-dense spatial tile)
    # nz    : (1, C, TS)  f32  VMEM   (noise, also the MSE target)
    # mask  : (1, C, TS)  int8 VMEM
    # bias  : (1, C, 1)   f32  VMEM   (conv bias + time bias, pre-folded, per b)
    # w1t/w2t: (C, C)     f32  VMEM   resident (w1t[d, c] = W1[c, d])
    # out   : (1, 8, 128) f32  VMEM   per-batch loss broadcast into one vreg
    # acc   : (C, 1)      f32  VMEM   scratch accumulator across S-tiles
    b = pl.program_id(0)
    s = pl.program_id(1)
    C = x0_ref.shape[1]

    @pl.when(s == 0)
    def _():
        acc_ref[...] = jnp.zeros_like(acc_ref)

    a = coef_ref[3 * b]                          # sqrt_alphas_cumprod[t_b]
    s1m = coef_ref[3 * b + 1]                    # sqrt_one_minus_alphas_cumprod[t_b]

    x0 = x0_ref[0].astype(jnp.float32)           # bf16 -> f32 right after load
    ctx = ctx_ref[0].astype(jnp.float32)
    nz = nz_ref[0]                               # (C, TS) f32
    m = mask_ref[0] != 0                         # int8 -> bool

    # q_sample + context masking (single select)
    x = a * x0 + s1m * nz
    x = jnp.where(m, ctx, x)

    # synthetic 1x1-conv denoiser: channel mix as broadcasted VPU FMAs (C tiny)
    # h[d, t] = sum_c W1[c, d] * x[c, t] + sum_c W2[c, d] * ctx[c, t] + bias[d]
    w1 = w1t_ref[...]                            # (C, C) loaded once per step
    w2 = w2t_ref[...]
    h = bias_ref[0]                              # (C, 1) broadcasts over lanes
    for c in range(C):                           # static, 2C broadcast-FMAs total
        h = h + (w1[:, c:c + 1] * x[c:c + 1, :] + w2[:, c:c + 1] * ctx[c:c + 1, :])

    # masked MSE partial sums: lane-reduce (XLU) into the f32 accumulator
    diff = jnp.where(m, 0.0, h - nz)
    acc_ref[...] += jnp.sum(diff * diff, axis=-1, keepdims=True)

    @pl.when(s == pl.num_programs(1) - 1)
    def _():
        lw_over_n = coef_ref[3 * b + 2]          # loss_weight[t_b] / (C*H*W)
        loss_b = jnp.sum(acc_ref[...]) * lw_over_n
        out_ref[0] = jnp.full((8, 128), loss_b, jnp.float32)


def _pick_tile(S, max_ts=2048):
    for ts in (4096, 2048, 1024, 512, 256, 128):
        if ts <= max_ts and S % ts == 0:
            return ts
    return S                                      # single full-S block fallback


def diffusion_loss_pallas(x0_bf16, noise_f32, ctx_bf16, mask_i8,
                          coefs, bias_fold, w1t, w2t, *, max_tile=2048):
    B, C, S = x0_bf16.shape
    TS = _pick_tile(S, max_tile)
    grid = (B, S // TS)

    stream = lambda: pl.BlockSpec((1, C, TS), lambda b, s: (b, 0, s))

    out = pl.pallas_call(
        _diffusion_loss_kernel,
        out_shape=jax.ShapeDtypeStruct((B, 8, 128), jnp.float32),
        grid_spec=pltpu.PrefetchScalarGridSpec(
            num_scalar_prefetch=0,
            grid=grid,
            in_specs=[
                pl.BlockSpec(memory_space=pltpu.MemorySpace.SMEM),   # coefs (3B,)
                stream(),                                            # x0   bf16
                stream(),                                            # noise f32
                stream(),                                            # ctx  bf16
                stream(),                                            # mask int8
                pl.BlockSpec((1, C, 1), lambda b, s: (b, 0, 0)),     # folded bias
                pl.BlockSpec((C, C), lambda b, s: (0, 0)),           # W1^T resident
                pl.BlockSpec((C, C), lambda b, s: (0, 0)),           # W2^T resident
            ],
            out_specs=pl.BlockSpec((1, 8, 128), lambda b, s: (b, 0, 0)),
            scratch_shapes=[pltpu.VMEM((C, 1), jnp.float32)],
        ),
        compiler_params=pltpu.CompilerParams(
            dimension_semantics=("parallel", "arbitrary")),
    )(coefs, x0_bf16, noise_f32, ctx_bf16, mask_i8, bias_fold, w1t, w2t)
    return out[:, 0, 0]                                              # (B,) per-batch loss


# ----------------------------------------------------------------------------
# Wrapper reproducing GaussianDiffusion.forward semantics
# ----------------------------------------------------------------------------
def gaussian_diffusion_forward(img, context, mask, key, buffers, params,
                               num_timesteps, *, debug_check_ref=False):
    # img, context: (B, C, H, W) float32 (NCHW, torch convention); mask: bool NCHW
    B, C, H, W = img.shape
    S = H * W
    inv_n = 1.0 / float(C * S)

    # lane-dense channels-first layout: pure reshape, no transpose pass.
    # bf16 image/context streams + int8 mask cut HBM bytes ~2x vs all-f32.
    x0_bf = img.reshape(B, C, S).astype(jnp.bfloat16)
    ctx_bf = context.reshape(B, C, S).astype(jnp.bfloat16)
    mask_i8 = mask.reshape(B, C, S).astype(jnp.int8)

    k_t, k_n = jax.random.split(key)
    t = jax.random.randint(k_t, (B,), 0, num_timesteps)            # torch.randint
    noise = jax.random.normal(k_n, (B, C, S), jnp.float32)         # torch.randn_like

    # per-t scalars, flat 1-D for unpadded SMEM: [a_b, sqrt(1-a)_b, lw_b/(C*H*W)]
    coefs = jnp.stack([buffers['sqrt_alphas_cumprod'][t],
                       buffers['sqrt_one_minus_alphas_cumprod'][t],
                       buffers['loss_weight'][t] * inv_n], axis=1).reshape(-1)

    # deterministic sinusoidal time embedding -> per-batch channel bias (glue),
    # folded with the conv bias into a single (B, C, 1) tensor.
    freqs = jnp.exp(-jnp.arange(C, dtype=jnp.float32)
                    * (math.log(10000.0) / max(C - 1, 1)))
    te = jnp.sin(t[:, None].astype(jnp.float32) * freqs[None, :])  # (B, C)
    tbias = te @ params['Wt']                                      # (B, C)
    bias_fold = (tbias + params['bias'][None, :]).reshape(B, C, 1)

    w1t = params['W1'].T                                           # w1t[d, c] = W1[c, d]
    w2t = params['W2'].T

    per_batch = diffusion_loss_pallas(x0_bf, noise, ctx_bf, mask_i8,
                                      coefs, bias_fold, w1t, w2t)
    loss = jnp.mean(per_batch)                                     # loss.mean()

    if not debug_check_ref:
        return loss

    # ---- pure-JAX reference (verification only, gated behind debug flag) ----
    x0f = x0_bf.astype(jnp.float32)
    ctxf = ctx_bf.astype(jnp.float32)
    a_t = buffers['sqrt_alphas_cumprod'][t].reshape(B, 1, 1)
    b_t = buffers['sqrt_one_minus_alphas_cumprod'][t].reshape(B, 1, 1)
    mb = mask_i8 != 0
    x = a_t * x0f + b_t * noise
    x = jnp.where(mb, ctxf, x)
    h = (jnp.sum(w1t[None, :, :, None] * x[:, None, :, :], axis=2)
         + jnp.sum(w2t[None, :, :, None] * ctxf[:, None, :, :], axis=2)
         + bias_fold)
    diff = jnp.where(mb, 0.0, h - noise)
    ref_per_batch = jnp.mean(diff * diff, axis=(1, 2)) * buffers['loss_weight'][t]
    ref_loss = jnp.mean(ref_per_batch)
    return loss, ref_loss


# ----------------------------------------------------------------------------
if __name__ == "__main__":
    B, C, H, W = 2, 4, 64, 64          # S = 4096 -> grid (B, 2): exercises the
    num_timesteps = 1000               # S-tile accumulation + parallel B axis.

    key = jax.random.PRNGKey(0)
    k_img, k_ctx, k_mask, k_w1, k_w2, k_wt, k_fwd = jax.random.split(key, 7)

    img = jax.random.normal(k_img, (B, C, H, W), jnp.float32)      # NCHW
    context = jax.random.normal(k_ctx, (B, C, H, W), jnp.float32)  # NCHW
    mask = jax.random.bernoulli(k_mask, 0.3, (B, C, H, W))         # bool NCHW

    buffers = make_diffusion_buffers(num_timesteps)

    scale = 1.0 / math.sqrt(C)
    params = dict(
        W1=jax.random.normal(k_w1, (C, C), jnp.float32) * scale,
        W2=jax.random.normal(k_w2, (C, C), jnp.float32) * scale,
        Wt=jax.random.normal(k_wt, (C, C), jnp.float32) * scale,
        bias=jnp.zeros((C,), jnp.float32),
    )

    loss, ref_loss = gaussian_diffusion_forward(
        img, context, mask, k_fwd, buffers, params, num_timesteps,
        debug_check_ref=True)
    loss = jax.block_until_ready(loss)
    ref_loss = jax.block_until_ready(ref_loss)

    np.testing.assert_allclose(np.asarray(loss), np.asarray(ref_loss),
                               rtol=1e-4, atol=1e-5)
    print("KERNEL_OK")
</pallas_src>

<mosaic_0001>
module attributes {stable_mosaic.version = 11 : i64} {
  func.func @_diffusion_loss_kernel(%arg0: i32, %arg1: i32, %arg2: memref<6xf32, #tpu.memory_space<smem>>, %arg3: memref<1x4x2048xbf16, #tpu.memory_space<vmem>>, %arg4: memref<1x4x2048xf32, #tpu.memory_space<vmem>>, %arg5: memref<1x4x2048xbf16, #tpu.memory_space<vmem>>, %arg6: memref<1x4x2048xi8, #tpu.memory_space<vmem>>, %arg7: memref<1x4x1xf32, #tpu.memory_space<vmem>>, %arg8: memref<4x4xf32, #tpu.memory_space<vmem>>, %arg9: memref<4x4xf32, #tpu.memory_space<vmem>>, %arg10: memref<1x8x128xf32, #tpu.memory_space<vmem>>, %arg11: memref<4x1xf32, #tpu.memory_space<vmem>>) attributes {dimension_semantics = [#tpu.dimension_semantics<parallel>, #tpu.dimension_semantics<arbitrary>], iteration_bounds = array<i64: 2, 2>, scalar_prefetch = 0 : i64, scratch_operands = 1 : i64, tpu.core_type = #tpu.core_type<tc>, window_params = [{transform_indices = @transform_0, window_bounds = array<i64: 6>}, {transform_indices = @transform_1, window_bounds = array<i64: 1, 4, 2048>}, {transform_indices = @transform_2, window_bounds = array<i64: 1, 4, 2048>}, {transform_indices = @transform_3, window_bounds = array<i64: 1, 4, 2048>}, {transform_indices = @transform_4, window_bounds = array<i64: 1, 4, 2048>}, {transform_indices = @transform_5, window_bounds = array<i64: 1, 4, 1>}, {pipeline_mode = #tpu.pipeline_mode<synchronous>, transform_indices = @transform_6, window_bounds = array<i64: 4, 4>}, {pipeline_mode = #tpu.pipeline_mode<synchronous>, transform_indices = @transform_7, window_bounds = array<i64: 4, 4>}, {transform_indices = @transform_8, window_bounds = array<i64: 1, 8, 128>}]} {
    %c0_i32 = arith.constant 0 : i32
    %0 = arith.cmpi eq, %arg1, %c0_i32 : i32
    %1 = arith.extui %0 : i1 to i32
    %c0_i32_0 = arith.constant 0 : i32
    %2 = arith.cmpi ne, %1, %c0_i32_0 : i32
    scf.if %2 {
      %cst_27 = arith.constant 0.000000e+00 : f32
      %93 = vector.broadcast %cst_27 : f32 to vector<4x1xf32>
      %c0_28 = arith.constant 0 : index
      %c0_29 = arith.constant 0 : index
      %94 = vector.load %arg11[%c0_28, %c0_29] : memref<4x1xf32, #tpu.memory_space<vmem>>, vector<4x1xf32>
      tpu.vector_store %arg11[%c0_28, %c0_29], %93 {strides = array<i32>} : memref<4x1xf32, #tpu.memory_space<vmem>>, vector<4x1xf32>,
    } else {
    }
    %c3_i32 = arith.constant 3 : i32
    %3 = arith.muli %c3_i32, %arg0 : i32
    %4 = arith.index_cast %3 : i32 to index
    %5 = memref.load %arg2[%4] : memref<6xf32, #tpu.memory_space<smem>>
    %c3_i32_1 = arith.constant 3 : i32
    %6 = arith.muli %c3_i32_1, %arg0 : i32
    %c1_i32 = arith.constant 1 : i32
    %7 = arith.addi %6, %c1_i32 : i32
    %8 = arith.index_cast %7 : i32 to index
    %9 = memref.load %arg2[%8] : memref<6xf32, #tpu.memory_space<smem>>
    %c0 = arith.constant 0 : index
    %c0_2 = arith.constant 0 : index
    %c0_3 = arith.constant 0 : index
    %10 = vector.load %arg3[%c0, %c0_2, %c0_3] : memref<1x4x2048xbf16, #tpu.memory_space<vmem>>, vector<1x4x2048xbf16>
    %11 = vector.shape_cast %10 : vector<1x4x2048xbf16> to vector<4x2048xbf16>
    %12 = arith.extf %11 : vector<4x2048xbf16> to vector<4x2048xf32>
    %c0_4 = arith.constant 0 : index
    %c0_5 = arith.constant 0 : index
    %c0_6 = arith.constant 0 : index
    %13 = vector.load %arg5[%c0_4, %c0_5, %c0_6] : memref<1x4x2048xbf16, #tpu.memory_space<vmem>>, vector<1x4x2048xbf16>
    %14 = vector.shape_cast %13 : vector<1x4x2048xbf16> to vector<4x2048xbf16>
    %15 = arith.extf %14 : vector<4x2048xbf16> to vector<4x2048xf32>
    %c0_7 = arith.constant 0 : index
    %c0_8 = arith.constant 0 : index
    %c0_9 = arith.constant 0 : index
    %16 = vector.load %arg4[%c0_7, %c0_8, %c0_9] : memref<1x4x2048xf32, #tpu.memory_space<vmem>>, vector<1x4x2048xf32>
    %17 = vector.shape_cast %16 : vector<1x4x2048xf32> to vector<4x2048xf32>
    %c0_10 = arith.constant 0 : index
    %c0_11 = arith.constant 0 : index
    %c0_12 = arith.constant 0 : index
    %18 = vector.load %arg6[%c0_10, %c0_11, %c0_12] : memref<1x4x2048xi8, #tpu.memory_space<vmem>>, vector<1x4x2048xi8>
    %19 = vector.shape_cast %18 : vector<1x4x2048xi8> to vector<4x2048xi8>
    %c0_i8 = arith.constant 0 : i8
    %20 = vector.broadcast %c0_i8 : i8 to vector<4x2048xi8>
    %21 = arith.cmpi ne, %19, %20 : vector<4x2048xi8>
    %22 = vector.broadcast %5 : f32 to vector<4x2048xf32>
    %23 = arith.mulf %22, %12 : vector<4x2048xf32>
    %24 = vector.broadcast %9 : f32 to vector<4x2048xf32>
    %25 = arith.mulf %24, %17 : vector<4x2048xf32>
    %26 = arith.addf %23, %25 : vector<4x2048xf32>
    %27 = arith.select %21, %15, %26 : vector<4x2048xi1>, vector<4x2048xf32>
    %c0_13 = arith.constant 0 : index
    %c0_14 = arith.constant 0 : index
    %28 = vector.load %arg8[%c0_13, %c0_14] : memref<4x4xf32, #tpu.memory_space<vmem>>, vector<4x4xf32>
    %c0_15 = arith.constant 0 : index
    %c0_16 = arith.constant 0 : index
    %29 = vector.load %arg9[%c0_15, %c0_16] : memref<4x4xf32, #tpu.memory_space<vmem>>, vector<4x4xf32>
    %c0_17 = arith.constant 0 : index
    %c0_18 = arith.constant 0 : index
    %c0_19 = arith.constant 0 : index
    %30 = vector.load %arg7[%c0_17, %c0_18, %c0_19] : memref<1x4x1xf32, #tpu.memory_space<vmem>>, vector<1x4x1xf32>
    %31 = vector.shape_cast %30 : vector<1x4x1xf32> to vector<4x1xf32>
    %32 = vector.extract_strided_slice %28 {offsets = [0, 0], sizes = [4, 1], strides = [1, 1]} : vector<4x4xf32> to vector<4x1xf32>
    %33 = vector.extract_strided_slice %27 {offsets = [0, 0], sizes = [1, 2048], strides = [1, 1]} : vector<4x2048xf32> to vector<1x2048xf32>
    %34 = vector.broadcast %32 : vector<4x1xf32> to vector<4x2048xf32>
    %35 = vector.broadcast %33 : vector<1x2048xf32> to vector<4x2048xf32>
    %36 = arith.mulf %34, %35 : vector<4x2048xf32>
    %37 = vector.extract_strided_slice %29 {offsets = [0, 0], sizes = [4, 1], strides = [1, 1]} : vector<4x4xf32> to vector<4x1xf32>
    %38 = vector.extract_strided_slice %15 {offsets = [0, 0], sizes = [1, 2048], strides = [1, 1]} : vector<4x2048xf32> to vector<1x2048xf32>
    %39 = vector.broadcast %37 : vector<4x1xf32> to vector<4x2048xf32>
    %40 = vector.broadcast %38 : vector<1x2048xf32> to vector<4x2048xf32>
    %41 = arith.mulf %39, %40 : vector<4x2048xf32>
    %42 = arith.addf %36, %41 : vector<4x2048xf32>
    %43 = vector.broadcast %31 : vector<4x1xf32> to vector<4x2048xf32>
    %44 = arith.addf %43, %42 : vector<4x2048xf32>
    %45 = vector.extract_strided_slice %28 {offsets = [0, 1], sizes = [4, 1], strides = [1, 1]} : vector<4x4xf32> to vector<4x1xf32>
    %46 = vector.extract_strided_slice %27 {offsets = [1, 0], sizes = [1, 2048], strides = [1, 1]} : vector<4x2048xf32> to vector<1x2048xf32>
    %47 = vector.broadcast %45 : vector<4x1xf32> to vector<4x2048xf32>
    %48 = vector.broadcast %46 : vector<1x2048xf32> to vector<4x2048xf32>
    %49 = arith.mulf %47, %48 : vector<4x2048xf32>
    %50 = vector.extract_strided_slice %29 {offsets = [0, 1], sizes = [4, 1], strides = [1, 1]} : vector<4x4xf32> to vector<4x1xf32>
    %51 = vector.extract_strided_slice %15 {offsets = [1, 0], sizes = [1, 2048], strides = [1, 1]} : vector<4x2048xf32> to vector<1x2048xf32>
    %52 = vector.broadcast %50 : vector<4x1xf32> to vector<4x2048xf32>
    %53 = vector.broadcast %51 : vector<1x2048xf32> to vector<4x2048xf32>
    %54 = arith.mulf %52, %53 : vector<4x2048xf32>
    %55 = arith.addf %49, %54 : vector<4x2048xf32>
    %56 = arith.addf %44, %55 : vector<4x2048xf32>
    %57 = vector.extract_strided_slice %28 {offsets = [0, 2], sizes = [4, 1], strides = [1, 1]} : vector<4x4xf32> to vector<4x1xf32>
    %58 = vector.extract_strided_slice %27 {offsets = [2, 0], sizes = [1, 2048], strides = [1, 1]} : vector<4x2048xf32> to vector<1x2048xf32>
    %59 = vector.broadcast %57 : vector<4x1xf32> to vector<4x2048xf32>
    %60 = vector.broadcast %58 : vector<1x2048xf32> to vector<4x2048xf32>
    %61 = arith.mulf %59, %60 : vector<4x2048xf32>
    %62 = vector.extract_strided_slice %29 {offsets = [0, 2], sizes = [4, 1], strides = [1, 1]} : vector<4x4xf32> to vector<4x1xf32>
    %63 = vector.extract_strided_slice %15 {offsets = [2, 0], sizes = [1, 2048], strides = [1, 1]} : vector<4x2048xf32> to vector<1x2048xf32>
    %64 = vector.broadcast %62 : vector<4x1xf32> to vector<4x2048xf32>
    %65 = vector.broadcast %63 : vector<1x2048xf32> to vector<4x2048xf32>
    %66 = arith.mulf %64, %65 : vector<4x2048xf32>
    %67 = arith.addf %61, %66 : vector<4x2048xf32>
    %68 = arith.addf %56, %67 : vector<4x2048xf32>
    %69 = vector.extract_strided_slice %28 {offsets = [0, 3], sizes = [4, 1], strides = [1, 1]} : vector<4x4xf32> to vector<4x1xf32>
    %70 = vector.extract_strided_slice %27 {offsets = [3, 0], sizes = [1, 2048], strides = [1, 1]} : vector<4x2048xf32> to vector<1x2048xf32>
    %71 = vector.broadcast %69 : vector<4x1xf32> to vector<4x2048xf32>
    %72 = vector.broadcast %70 : vector<1x2048xf32> to vector<4x2048xf32>
    %73 = arith.mulf %71, %72 : vector<4x2048xf32>
    %74 = vector.extract_strided_slice %29 {offsets = [0, 3], sizes = [4, 1], strides = [1, 1]} : vector<4x4xf32> to vector<4x1xf32>
    %75 = vector.extract_strided_slice %15 {offsets = [3, 0], sizes = [1, 2048], strides = [1, 1]} : vector<4x2048xf32> to vector<1x2048xf32>
    %76 = vector.broadcast %74 : vector<4x1xf32> to vector<4x2048xf32>
    %77 = vector.broadcast %75 : vector<1x2048xf32> to vector<4x2048xf32>
    %78 = arith.mulf %76, %77 : vector<4x2048xf32>
    %79 = arith.addf %73, %78 : vector<4x2048xf32>
    %80 = arith.addf %68, %79 : vector<4x2048xf32>
    %81 = arith.subf %80, %17 : vector<4x2048xf32>
    %cst = arith.constant 0.000000e+00 : f32
    %82 = vector.broadcast %cst : f32 to vector<4x2048xf32>
    %83 = arith.select %21, %82, %81 : vector<4x2048xi1>, vector<4x2048xf32>
    %c0_20 = arith.constant 0 : index
    %c0_21 = arith.constant 0 : index
    %84 = vector.load %arg11[%c0_20, %c0_21] : memref<4x1xf32, #tpu.memory_space<vmem>>, vector<4x1xf32>
    %85 = arith.mulf %83, %83 : vector<4x2048xf32>
    %cst_22 = arith.constant dense<0.000000e+00> : vector<4xf32>
    %86 = vector.multi_reduction <add>, %85, %cst_22 [1] : vector<4x2048xf32> to vector<4xf32>
    %87 = vector.shape_cast %86 : vector<4xf32> to vector<4x1xf32>
    %88 = arith.addf %84, %87 : vector<4x1xf32>
    %c0_23 = arith.constant 0 : index
    %c0_24 = arith.constant 0 : index
    %89 = vector.load %arg11[%c0_23, %c0_24] : memref<4x1xf32, #tpu.memory_space<vmem>>, vector<4x1xf32>
    tpu.vector_store %arg11[%c0_23, %c0_24], %88 {strides = array<i32>} : memref<4x1xf32, #tpu.memory_space<vmem>>, vector<4x1xf32>,
    %c1_i32_25 = arith.constant 1 : i32
    %90 = arith.cmpi eq, %arg1, %c1_i32_25 : i32
    %91 = arith.extui %90 : i1 to i32
    %c0_i32_26 = arith.constant 0 : i32
    %92 = arith.cmpi ne, %91, %c0_i32_26 : i32
    scf.if %92 {
      %c3_i32_27 = arith.constant 3 : i32
      %93 = arith.muli %c3_i32_27, %arg0 : i32
      %c2_i32 = arith.constant 2 : i32
      %94 = arith.addi %93, %c2_i32 : i32
      %95 = arith.index_cast %94 : i32 to index
      %96 = memref.load %arg2[%95] : memref<6xf32, #tpu.memory_space<smem>>
      %c0_28 = arith.constant 0 : index
      %c0_29 = arith.constant 0 : index
      %97 = vector.load %arg11[%c0_28, %c0_29] : memref<4x1xf32, #tpu.memory_space<vmem>>, vector<4x1xf32>
      %98 = vector.shape_cast %97 : vector<4x1xf32> to vector<1x4x1xf32>
      %cst_30 = arith.constant dense<0.000000e+00> : vector<1xf32>
      %99 = vector.multi_reduction <add>, %98, %cst_30 [1, 2] : vector<1x4x1xf32> to vector<1xf32>
      %100 = vector.shape_cast %99 : vector<1xf32> to vector<1x1x1xf32>
      %101 = vector.extract %100[0, 0, 0] : f32 from vector<1x1x1xf32>
      %102 = arith.mulf %101, %96 : f32
      %103 = vector.broadcast %102 : f32 to vector<8x128xf32>
      %c0_31 = arith.constant 0 : index
      %c0_32 = arith.constant 0 : index
      %c0_33 = arith.constant 0 : index
      %104 = vector.load %arg10[%c0_31, %c0_32, %c0_33] : memref<1x8x128xf32, #tpu.memory_space<vmem>>, vector<1x8x128xf32>
      %105 = vector.shape_cast %104 : vector<1x8x128xf32> to vector<8x128xf32>
      %106 = vector.shape_cast %103 : vector<8x128xf32> to vector<1x8x128xf32>
      tpu.vector_store %arg10[%c0_31, %c0_32, %c0_33], %106 {strides = array<i32>} : memref<1x8x128xf32, #tpu.memory_space<vmem>>, vector<1x8x128xf32>,
    } else {
    }
    return
  }
  func.func @transform_0(%arg0: i32, %arg1: i32) -> i32 {
    %c0_i32 = arith.constant 0 : i32
    %c0_i32_0 = arith.constant 0 : i32
    return %c0_i32 : i32
  }
  func.func @transform_1(%arg0: i32, %arg1: i32) -> (i32, i32, i32) {
    %c0_i32 = arith.constant 0 : i32
    %c0_i32_0 = arith.constant 0 : i32
    return %arg0, %c0_i32, %arg1 : i32, i32, i32
  }
  func.func @transform_2(%arg0: i32, %arg1: i32) -> (i32, i32, i32) {
    %c0_i32 = arith.constant 0 : i32
    %c0_i32_0 = arith.constant 0 : i32
    return %arg0, %c0_i32, %arg1 : i32, i32, i32
  }
  func.func @transform_3(%arg0: i32, %arg1: i32) -> (i32, i32, i32) {
    %c0_i32 = arith.constant 0 : i32
    %c0_i32_0 = arith.constant 0 : i32
    return %arg0, %c0_i32, %arg1 : i32, i32, i32
  }
  func.func @transform_4(%arg0: i32, %arg1: i32) -> (i32, i32, i32) {
    %c0_i32 = arith.constant 0 : i32
    %c0_i32_0 = arith.constant 0 : i32
    return %arg0, %c0_i32, %arg1 : i32, i32, i32
  }
  func.func @transform_5(%arg0: i32, %arg1: i32) -> (i32, i32, i32) {
    %c0_i32 = arith.constant 0 : i32
    %c0_i32_0 = arith.constant 0 : i32
    %c0_i32_1 = arith.constant 0 : i32
    return %arg0, %c0_i32, %c0_i32_0 : i32, i32, i32
  }
  func.func @transform_6(%arg0: i32, %arg1: i32) -> (i32, i32) {
    %c0_i32 = arith.constant 0 : i32
    %c0_i32_0 = arith.constant 0 : i32
    %c0_i32_1 = arith.constant 0 : i32
    return %c0_i32, %c0_i32_0 : i32, i32
  }
  func.func @transform_7(%arg0: i32, %arg1: i32) -> (i32, i32) {
    %c0_i32 = arith.constant 0 : i32
    %c0_i32_0 = arith.constant 0 : i32
    %c0_i32_1 = arith.constant 0 : i32
    return %c0_i32, %c0_i32_0 : i32, i32
  }
  func.func @transform_8(%arg0: i32, %arg1: i32) -> (i32, i32, i32) {
    %c0_i32 = arith.constant 0 : i32
    %c0_i32_0 = arith.constant 0 : i32
    %c0_i32_1 = arith.constant 0 : i32
    return %arg0, %c0_i32, %c0_i32_0 : i32, i32, i32
  }
}

</mosaic_0001>

<bundles_post_ra>
// kernel: tpu_custom_call.1
= control target key start
LH: loop header
LB: loop body
LE: loop exit
PB: predicated region body
PF: predicated region fallthrough
CT: control target
= control target key end

     0   :  { %s4583_s0 = inlined_call_operand.vmem [shape: f32[6], index: 0, kind: input, shape index: {}]   ;;  %s4584_s1 = inlined_call_operand.hbm [shape: bf16[2,4,4096], index: 1, kind: input, shape index: {}]   ;;  %s4585_s2 = inlined_call_operand.hbm [shape: f32[2,4,4096], index: 2, kind: input, shape index: {}]   ;;  %s4586_s3 = inlined_call_operand.hbm [shape: bf16[2,4,4096], index: 3, kind: input, shape index: {}]   ;;  %s4587_s4 = inlined_call_operand.hbm [shape: s8[2,4,4096], index: 4, kind: input, shape index: {}]   ;;  %s4588_s5 = inlined_call_operand.vmem [shape: f32[2,4,1], index: 5, kind: input, shape index: {}]   ;;  %s4589_s6 = inlined_call_operand.vmem [shape: f32[4,4], index: 6, kind: input, shape index: {}]   ;;  %s4590_s7 = inlined_call_operand.vmem [shape: f32[4,4], index: 7, kind: input, shape index: {}]   ;;  %s4591_s8 = inlined_call_operand.hbm [shape: f32[2,8,128], index: 8, kind: output, shape index: {}]  }
   0x1   :  { %4646 = sst [smem:[#allocation173_spill]] %s4583_s0 }
   0x2   :  { %4647 = sst [smem:[#allocation174_spill]] %s4585_s2 }
   0x3   :  { %4648 = sst [smem:[#allocation175_spill]] %s4589_s6 }
   0x4   :  { %4649 = sst [smem:[#allocation176_spill]] %s4590_s7 }
   0x5   :  { %4650 = sst [smem:[#allocation177_spill]] %s4591_s8 }
   0x6   :  { %13 = vsyncpa [#allocation6], 0 }
   0x7   :  { %14 = vsyncpa [#allocation4], 0 }
   0x8   :  { %16 = vsyncpa [#allocation4 + $0x1], 0 }
   0x9   :  { %17 = vsyncpa [#allocation9], 0 }
   0xa   :  { %19 = vsyncpa [#allocation9 + $0x1], 0 }
   0xb   :  { %20 = vsyncpa [#allocation12], 0 }
   0xc   :  { %22 = vsyncpa [#allocation12 + $0x1], 0 }
   0xd   :  { %23 = vsyncpa [#allocation5], 0 }
   0xe   :  { %25 = vsyncpa [#allocation5 + $0x1], 0  ;;  %s2932_s27 = smov 0   ;;  %s2934_s28 = smov 0  }
   0xf   :  { %s2936_s29 = smov 0   ;;  %s2938_s30 = smov 0  }
  0x10   :  { %s2940_s9 = smov 0   ;;  %s2942_s10 = smov 0  }
  0x11   :  { %s2944_s11 = smov 0   ;;  %s2946_s12 = smov 0  }
  0x12   :  { %s2948_s13 = smov 0   ;;  %s2950_s14 = smov 0  }
  0x13   :  { %s2952_s15 = smov 0  }
  0x14 LB: > { %4651 = sst [smem:[#allocation19_spill]] %s2842_s29  ;;  %s40_s16 = sadd.s32 1, %s2866_s13  ;;  %s2874_s15 = sphi %s2952_s15, %s31_s15   ;;  %s2870_s14 = sphi %s2950_s14, %s5037_s14   ;;  %s2866_s13 = sphi %s2948_s13, %s5036_s13   ;;  %s2862_s12 = sphi %s2946_s12, %s5035_s12   ;;  %s2858_s11 = sphi %s2944_s11, %s5034_s11   ;;  %s2854_s10 = sphi %s2942_s10, %s5033_s10   ;;  %s2850_s9 = sphi %s2940_s9, %s5041_s9   ;;  %s2846_s30 = sphi %s2938_s30, %s5040_s30   ;;  %s2842_s29 = sphi %s2936_s29, %s5031_s29   ;;  %s2838_s28 = sphi %s2934_s28, %s5039_s28   ;;  %s2834_s27 = sphi %s2932_s27, %s5038_s27  }
  0x15   : > { %4652 = sst [smem:[#allocation20_spill]] %s2854_s10  ;;  %s43_s17 = sadd.s32 1, %s2870_s14 }
  0x16   : > { %4653 = sst [smem:[#allocation21_spill]] %s2866_s13  ;;  %p41_p0 = scmp.ge.s32.totalorder %s40_s16, 2 }
  0x17   : > { %4654 = sst [smem:[#allocation22_spill]] %s2870_s14  ;;  %s73_s18 = sadd.s32 1, %s2854_s10 }
  0x18   : > { %p80_p1 = scmp.ne.s32.totalorder %s2854_s10, %s2850_s9  ;;  %p81_p2 = scmp.eq.s32.totalorder %s2874_s15, 0 }
  0x19   : > { %s5043_s16 = smov (%p41_p0, %s40_s16), 0  ;;  %s5045_s17 = smov (!%p41_p0, %s43_s17), %s2870_s14 }
  0x1a   : > { %4655 = sst [smem:[#allocation23_spill]] %s5043_s16  ;;  %s69_s19 = ssub.s32 %s2866_s13, %s5043_s16 }
  0x1b   : > { %p82_p3 = por %p81_p2, %p80_p1  ;;  %p45_p4 = scmp.ge.s32.totalorder %s5045_s17, 2 }
  0x1c   : > { %p2486_p5 = scmp.lt.s32.totalorder %s2874_s15, 4  ;;  %s3000_s20 = sand.u32 1, %s2854_s10  }
  0x1d   : > { %s5047_s17 = smov (%p45_p4, %s5045_s17), 0  ;;  %s2419_s21 = sshll.u32 %s2866_s13, 4 }
  0x1e   : > { %4656 = sst [smem:[#allocation24_spill]] %s5047_s17  ;;  %s2420_s22 = sshll.u32 %s2870_s14, 5 }
  0x1f   : > { %s3008_s23 = ssub.s32 %s2870_s14, %s5047_s17  ;;  %s3010_s24 = sadd.s32 %s2420_s22, %s2419_s21 }
  0x20   : > { %s70_s25 = sor.u32 %s69_s19, %s3008_s23  ;;  %p3014_p8 = pnand %p2486_p5, %p82_p3 }
  0x21   : > { %p71_p7 = scmp.eq.s32.totalorder %s70_s25, 0  ;;  %s326_s16 = sand.u32 1, %s2874_s15  }
  0x22   : > { %s4657_s26 = scalar_select %p3014_p8, 1, 0 }
  0x23   : > { %s2422_s8 = sshll.u32 %s3000_s20, 6  ;;  %s2425_s13 = sshll.u32 %s3010_s24, 6 }
  0x24   : > { %s3021_s7 = scalar_select %p71_p7, %s2854_s10, %s73_s18  }
  0x25   : > { %s4659_s2 = sld [smem:[#allocation174_spill]]  ;;  %s330_s19 = scalar_lea.vmem [#allocation8], %s2422_s8 }
  0x26   : > { %4658 = sst [smem:[#allocation25_spill]] %s3021_s7  ;;  %s340_s21 = sshll.u32 %s330_s19, 4  ;;  %s3029_s21 = int_to_ptr.vmem [resolvable:$true] %s340_s21 }
  0x27   : > { %s3031_s22 = scalar_lea.sflag [#allocation9], %s326_s16  ;;  %p3037_p10 = pneg %p3014_p8 }
  0x2b   : > { %s3027_s6 = scalar_lea.hbm %s4659_s2, %s2425_s13  ;;  %s2610_s8 = scalar_lea.hbm %s4659_s2, 4096 }
  0x2c   : > { %s2605_s25 = scalar_lea.hbm %s3027_s6, 1024  ;;  %p2611_p13 = scmp.lt.u32.totalorder %s3027_s6, %s4659_s2 }
  0x2d   : > { %p2606_p9 = scmp.ne.s32.totalorder %s3027_s6, %s2605_s25  ;;  %p2612_p0 = scmp.lt.u32.totalorder %s2610_s8, %s2605_s25 }
  0x2e   : > { %p2614_p2 = scmp.lt.u32.totalorder %s2605_s25, %s3027_s6 }
  0x2f   : > { %p2608_p11 = pnand %p3037_p10, %p2606_p9  ;;  %p2613_p1 = por %p2612_p0, %p2611_p13 }
  0x31   : > { %p2609_p12 = pneg %p2608_p11  ;;  %p2615_p3 = por %p2614_p2, %p2613_p1 }
  0x33   : > { %p2616_p4 = pnand %p2615_p3, %p2609_p12 }
  0x35   : > { %2619 = shalt.err (!%p2616_p4)
}
  0x36   : > { %s2620_s16 = scalar_lea.vmem %s3029_s21, 1024  ;;  %s2876_s13 = smov [#allocation8]  }
  0x37   : > { %p2621_p5 = scmp.ne.s32.totalorder %s3029_s21, %s2620_s16  ;;  %s2625_s14 = sshll.u32 %s2876_s13, 4  ;;  %s2626_s14 = int_to_ptr.vmem [resolvable:$false] %s2625_s14 }
  0x38   : > { %s2627_s17 = scalar_lea.vmem %s2626_s14, 2048  ;;  %p2628_p11 = scmp.lt.s32.totalorder %s3029_s21, %s2626_s14 }
  0x39   : > { %p2623_p7 = pnand %p2621_p5, %p3037_p10  ;;  %p2629_p6 = scmp.lt.s32.totalorder %s2627_s17, %s2620_s16 }
  0x3b   : > { %p2624_p9 = pneg %p2623_p7  ;;  %p2630_p13 = por %p2629_p6, %p2628_p11 }
  0x3d   : > { %p2631_p0 = pnand %p2630_p13, %p2624_p9 }
  0x3f   : > { %2634 = shalt.err (!%p2631_p0)
}
  0x40   : > { %2474 = dma.hbm_to_vmem [thread:$0]  (!%p3014_p8), %s3027_s6, 1024, %s3029_s21, %s3031_s22  }
  0x41   : > { %s3062_s25 = sadd.s32 4294967295, %s2874_s15   ;;  %s2414_s8 = sadd.s32 4294967294, %s2874_s15  }
  0x42   : > { %p86_p6 = scmp.ne.s32.totalorder %s2850_s9, %s2846_s30  ;;  %p4598_p12 = scmp.eq.s32.totalorder %s3062_s25, 0 }
  0x43   : > { %s251_s19 = sadd.s32 1, %s2842_s29  ;;  %p4661_p1 = scmp.eq.s32.totalorder %s3008_s23, 0 }
  0x44   : > { %p3076_p2 = por %p4598_p12, %p86_p6  ;;  %p261_p3 = scmp.ne.s32.totalorder %s2842_s29, %s2838_s28 }
  0x45   : > { %s3072_s16 = scalar_select %p4661_p1, %s2842_s29, %s251_s19  }
  0x46   : > { %s4663_s13 = scalar_select %p3076_p2, 1, 0 }
  0x47   : > { %4662 = sst [smem:[#allocation26_spill]] %s3072_s16  ;;  %p262_p4 = scmp.eq.s32.totalorder %s3062_s25, 3 }
  0x48   : > { %p267_p5 = scmp.ne.s32.totalorder %s2838_s28, %s2834_s27  ;;  %p268_p7 = scmp.eq.s32.totalorder %s2414_s8, 3 }
  0x49   : > { %p2415_p9 = scmp.ge.s32.totalorder %s2874_s15, 1  ;;  %p3086_p11 = por %p262_p4, %p261_p3 }
  0x4a   : > { %p275_p13 = scmp.lt.s32.totalorder %s2874_s15, 5  ;;  %p3091_p0 = por %p268_p7, %p267_p5 }
  0x4b   : > { %s4664_s6 = scalar_select %p3086_p11, 1, 0 }
  0x4c   : > { %s4665_s30 = scalar_select %p3091_p0, 1, 0 }
  0x4d   : > { %p3095_p6 = pnand %p2415_p9, %p275_p13  ;;  %s4668_s0 = sld [smem:[#allocation173_spill]] }
  0x4e   : > { %4666 = sst [smem:[#allocation27_spill]] %s4665_s30  ;;  %s4600_s8 = sshll.u32 %s3000_s20, 5 }
  0x4f   : > { %s4667_s23 = scalar_select %p3095_p6, 1, 0 }
  0x50   : > { %p2464_p1 = pneg %p3095_p6  ;;  %s4601_s19 = sshll.u32 %s3010_s24, 5 }
  0x51   : > { %s3117_s16 = scalar_lea.hbm %s4584_s1, %s4601_s19  ;;  %s309_s21 = scalar_lea.vmem [#allocation7], %s4600_s8 }
  0x52   : > { %p3108_p3 = pnand %p2464_p1, %p4598_p12  ;;  %s319_s14 = sshll.u32 %s309_s21, 4  ;;  %s3121_s14 = int_to_ptr.vmem [resolvable:$true] %s319_s14 }
  0x53   : > { %s288_s17 = sshll.u32 %s4668_s0, 4  ;;  %s289_s17 = int_to_ptr.vmem [resolvable:$true] %s288_s17 }
  0x54   : > { %s2635_s0 = scalar_lea.vmem %s289_s17, 16  ;;  %p2637_p5 = pneg %p3108_p3 }
  0x55   : > { %p2636_p4 = scmp.ne.s32.totalorder %s289_s17, %s2635_s0  ;;  %p2643_p13 = scmp.lt.s32.totalorder %s289_s17, %s289_s17 }
  0x56   : > { %p2644_p1 = scmp.lt.s32.totalorder %s2635_s0, %s2635_s0 }
  0x57   : > { %p2638_p7 = pnand %p2637_p5, %p2636_p4 }
  0x58   : > { %p2645_p12 = por %p2644_p1, %p2643_p13 }
  0x59   : > { %p2639_p9 = pneg %p2638_p7 }
  0x5b   : > { %p2646_p0 = pnand %p2645_p12, %p2639_p9 }
  0x5d   : > { %2649 = shalt.err (!%p2646_p0)
}
  0x5e   : > { %s2877_s7 = smov [#allocation3]   ;;  %s306_s10 = scalar_lea.sflag [#allocation4], %s3000_s20 }
  0x5f   : > { %2467 = dma.vmem_to_smem (!%p3108_p3), %s289_s17, 16, %s2877_s7, [#allocation6]  }
  0x60   : > { %s2650_s21 = scalar_lea.hbm %s3117_s16, 512  ;;  %s2655_s19 = scalar_lea.hbm %s4584_s1, 2048 }
  0x61   : > { %p2651_p11 = scmp.ne.s32.totalorder %s3117_s16, %s2650_s21  ;;  %p2656_p12 = scmp.lt.u32.totalorder %s3117_s16, %s4584_s1 }
  0x62   : > { %p2657_p0 = scmp.lt.u32.totalorder %s2655_s19, %s2650_s21  ;;  %p2659_p9 = scmp.lt.u32.totalorder %s2650_s21, %s3117_s16 }
  0x63   : > { %p2653_p4 = pnand %p2651_p11, %p3037_p10 }
  0x64   : > { %p2658_p7 = por %p2657_p0, %p2656_p12 }
  0x65   : > { %p2654_p5 = pneg %p2653_p4 }
  0x66   : > { %p2660_p13 = por %p2659_p9, %p2658_p7 }
  0x68   : > { %p2661_p1 = pnand %p2660_p13, %p2654_p5 }
  0x6a   : > { %2664 = shalt.err (!%p2661_p1)
}
  0x6b   : > { %s2665_s2 = scalar_lea.vmem %s3121_s14, 512  ;;  %s2878_s17 = smov [#allocation7]  }
  0x6c   : > { %p2666_p11 = scmp.ne.s32.totalorder %s3121_s14, %s2665_s2  ;;  %s2670_s8 = sshll.u32 %s2878_s17, 4  ;;  %s2671_s8 = int_to_ptr.vmem [resolvable:$false] %s2670_s8 }
  0x6d   : > { %s2672_s29 = scalar_lea.vmem %s2671_s8, 1024  ;;  %p2673_p2 = scmp.lt.s32.totalorder %s3121_s14, %s2671_s8 }
  0x6e   : > { %p2668_p3 = pnand %p2666_p11, %p3037_p10  ;;  %p2674_p6 = scmp.lt.s32.totalorder %s2672_s29, %s2665_s2 }
  0x70   : > { %p2669_p4 = pneg %p2668_p3  ;;  %p2675_p12 = por %p2674_p6, %p2673_p2 }
  0x72   : > { %p2676_p0 = pnand %p2675_p12, %p2669_p4 }
  0x74   : > { %2679 = shalt.err (!%p2676_p0)
}
  0x75   : > { %2471 = dma.hbm_to_vmem [thread:$0]  (!%p3014_p8), %s3117_s16, 512, %s3121_s14, %s306_s10  }
  0x76   : > { %s4670_s30 = sshll.u32 %s3010_s24, 5  ;;  %s4671_s0 = sshll.u32 %s3000_s20, 5 }
  0x77   : > { %s3154_s21 = scalar_lea.hbm %s4586_s3, %s4670_s30  ;;  %s351_s2 = scalar_lea.vmem [#allocation10], %s4671_s0 }
  0x78   : > { %s361_s17 = sshll.u32 %s351_s2, 4  ;;  %s2430_s8 = sshll.u32 %s3000_s20, 4  ;;  %s362_s17 = int_to_ptr.vmem [resolvable:$true] %s361_s17 }
  0x79   : > { %s2680_s29 = scalar_lea.hbm %s3154_s21, 512  ;;  %s2685_s10 = scalar_lea.hbm %s4586_s3, 2048 }
  0x7a   : > { %p2681_p2 = scmp.ne.s32.totalorder %s3154_s21, %s2680_s29  ;;  %p2686_p7 = scmp.lt.u32.totalorder %s3154_s21, %s4586_s3 }
  0x7b   : > { %p2687_p9 = scmp.lt.u32.totalorder %s2685_s10, %s2680_s29  ;;  %p2689_p1 = scmp.lt.u32.totalorder %s2680_s29, %s3154_s21 }
  0x7c   : > { %p2683_p6 = pnand %p2681_p2, %p3037_p10 }
  0x7d   : > { %p2688_p13 = por %p2687_p9, %p2686_p7 }
  0x7e   : > { %p2684_p5 = pneg %p2683_p6 }
  0x7f   : > { %p2690_p11 = por %p2689_p1, %p2688_p13 }
  0x81   : > { %p2691_p3 = pnand %p2690_p11, %p2684_p5 }
  0x83   : > { %2694 = shalt.err (!%p2691_p3)
}
  0x84   : > { %s2695_s7 = scalar_lea.vmem %s362_s17, 512  ;;  %s2879_s0 = smov [#allocation10]  }
  0x85   : > { %p2696_p4 = scmp.ne.s32.totalorder %s362_s17, %s2695_s7  ;;  %s2700_s2 = sshll.u32 %s2879_s0, 4  ;;  %s2701_s2 = int_to_ptr.vmem [resolvable:$false] %s2700_s2 }
  0x86   : > { %s2702_s16 = scalar_lea.vmem %s2701_s2, 1024  ;;  %p2703_p2 = scmp.lt.s32.totalorder %s362_s17, %s2701_s2 }
  0x87   : > { %p2698_p12 = pnand %p2696_p4, %p3037_p10  ;;  %p2704_p6 = scmp.lt.s32.totalorder %s2702_s16, %s2695_s7 }
  0x89   : > { %p2699_p0 = pneg %p2698_p12  ;;  %p2705_p8 = por %p2704_p6, %p2703_p2 }
  0x8b   : > { %p2706_p7 = pnand %p2705_p8, %p2699_p0 }
  0x8d   : > { %2709 = shalt.err (!%p2706_p7)
}
  0x8e   : > { %p4672_p9 = scmp.ne.s32.totalorder %s4657_s26, 0  ;;  %s2433_s29 = sshll.u32 %s3010_s24, 4 }
  0x8f   : > { %s3181_s30 = scalar_lea.hbm %s4587_s4, %s2433_s29  ;;  %s372_s19 = scalar_lea.vmem [#allocation11], %s2430_s8 }
  0x90   : > { %2477 = dma.hbm_to_vmem [thread:$0]  (!%p4672_p9), %s3154_s21, 512, %s362_s17, %s3031_s22  }
  0x91   : > { %s382_s7 = sshll.u32 %s372_s19, 4  ;;  %s369_s0 = scalar_lea.sflag [#allocation12], %s3000_s20  ;;  %s383_s7 = int_to_ptr.vmem [resolvable:$true] %s382_s7 }
  0x92   : > { %s2710_s2 = scalar_lea.hbm %s3181_s30, 256  ;;  %s2715_s21 = scalar_lea.hbm %s4587_s4, 1024 }
  0x93   : > { %p2711_p8 = scmp.ne.s32.totalorder %s3181_s30, %s2710_s2  ;;  %p2716_p1 = scmp.lt.u32.totalorder %s3181_s30, %s4587_s4 }
  0x94   : > { %p2717_p11 = scmp.lt.u32.totalorder %s2715_s21, %s2710_s2  ;;  %p2719_p4 = scmp.lt.u32.totalorder %s2710_s2, %s3181_s30 }
  0x95   : > { %p2713_p5 = pnand %p2711_p8, %p3037_p10 }
  0x96   : > { %p2718_p3 = por %p2717_p11, %p2716_p1 }
  0x97   : > { %p2714_p13 = pneg %p2713_p5 }
  0x98   : > { %p2720_p12 = por %p2719_p4, %p2718_p3 }
  0x9a   : > { %p2721_p0 = pnand %p2720_p12, %p2714_p13 }
  0x9c   : > { %2724 = shalt.err (!%p2721_p0)
}
  0x9d   : > { %s2725_s20 = scalar_lea.vmem %s383_s7, 256  ;;  %s2880_s8 = smov [#allocation11]  }
  0x9e   : > { %p2726_p2 = scmp.ne.s32.totalorder %s383_s7, %s2725_s20  ;;  %s2730_s29 = sshll.u32 %s2880_s8, 4  ;;  %s2731_s29 = int_to_ptr.vmem [resolvable:$false] %s2730_s29 }
  0x9f   : > { %s2732_s14 = scalar_lea.vmem %s2731_s29, 512  ;;  %p2733_p8 = scmp.lt.s32.totalorder %s383_s7, %s2731_s29 }
  0xa0   : > { %p2728_p6 = pnand %p2726_p2, %p3037_p10  ;;  %p2734_p5 = scmp.lt.s32.totalorder %s2732_s14, %s2725_s20 }
  0xa2   : > { %p2729_p7 = pneg %p2728_p6  ;;  %p2735_p9 = por %p2734_p5, %p2733_p8 }
  0xa4   : > { %p2736_p1 = pnand %p2735_p9, %p2729_p7 }
  0xa6   : > { %2739 = shalt.err (!%p2736_p1)
}
  0xa7   : > { %p4673_p11 = scmp.ne.s32.totalorder %s4657_s26, 0  ;;  %p4674_p13 = scmp.ne.s32.totalorder %s4667_s23, 0 }
  0xa9   : > { %2480 = dma.hbm_to_vmem [thread:$0]  (!%p4673_p11), %s3181_s30, 256, %s383_s7, %s369_s0  }
  0xaa   : > { %398 = sbr.rel (%p4674_p13) target bundleno = 825 (0x339), region = 52 }
  0xb1   : > { %p4675_p3 = scmp.eq.s32.totalorder %s3062_s25, 0 }
  0xb3   : > { %2813 = dma.done.wait (%p4675_p3), [#allocation6], 16   ;;  %p4676_p10 = pmov %p4675_p3 }
  0xb4   : > { %s404_s18 = sand.u32 1, %s2850_s9   ;;  %p4677_p9 = scmp.ne.s32.totalorder %s4663_s13, 0 }
  0xb5   : > { %2815 = vsyncadd (%p4676_p10), [#allocation6], 4294967280  ;;  %s2436_s10 = sshll.u32 %s404_s18, 5  ;;  %s405_s19 = scalar_lea.sflag [#allocation4], %s404_s18 }
  0xb6   : > { %s3210_s2 = scalar_lea.vmem [#allocation7], %s2436_s10 }
  0xb7   : > { %2817 = dma.done.wait (%p4677_p9), %s405_s19, 512  }
  0xb8   : > { %2819 = vsyncadd (%p4677_p9), %s405_s19, 4294966784  ;;  %s413_s26 = sand.u32 1, %s3062_s25   ;;  %s2437_s23 = sshll.u32 %s404_s18, 6 }
  0xb9   : > { %s414_s30 = scalar_lea.sflag [#allocation9], %s413_s26  ;;  %s3217_s7 = scalar_lea.vmem [#allocation8], %s2437_s23 }
  0xba   : > { %2821 = dma.done.wait (%p4677_p9), %s414_s30, 1536  }
  0xbb   : > { %2823 = vsyncadd (%p4677_p9), %s414_s30, 4294965760  ;;  %s2439_s0 = sshll.u32 %s404_s18, 4  ;;  %s3223_s24 = scalar_lea.vmem [#allocation10], %s2436_s10 }
  0xbc   : > { %s432_s22 = scalar_lea.sflag [#allocation12], %s404_s18  ;;  %s3225_s21 = scalar_lea.vmem [#allocation11], %s2439_s0 }
  0xbd   : > { %2825 = dma.done.wait (%p4677_p9), %s432_s22, 256  }
  0xbe   : > { %2827 = vsyncadd (%p4677_p9), %s432_s22, 4294967040 }
  0xbf   : > { %440 = sfence }
  0xc0   : > { %s485_s25 = sand.u32 1, %s2838_s28   ;;  %p492_p4 = scmp.lt.s32.totalorder %s2862_s12, 1 }
  0xc1   : > { %s3235_s17 = sshll.u32 %s485_s25, 3  ;;  %p2442_p12 = scmp.ne.s32.totalorder %s2858_s11, 0 }
  0xc2   : > { %s493_s16 = scalar_select %p492_p4, %s2862_s12, 1 }
  0xc3   : > { %s487_s18 = scalar_lea.vmem [#allocation13], %s3235_s17  ;;  %501 = sbr.rel (%p2442_p12) target bundleno = 202 (0xca), region = 76  ;;  %vm502_vm0 = vcmask (!%p2442_p12), 3072   ;;  %v2881_v0 = vmov (!%p2442_p12), 0.0  }
  0xc4   : > { %s2441_s20 = sshll.u32 %s493_s16, 2  ;;  %503 = vst.msk [vmem:[#allocation2] sm:$0xf] (!%p2442_p12), %vm502_vm0, %v2881_v0 }
  0xc5   : > { %s495_s14 = scalar_lea.vmem %s4588_s5, %s2441_s20 }
  0xca PF: > { %s4678_s19 = sld [smem:[#allocation175_spill]]  ;;  %v2882_v2 = vmov 1   ;;  %v4608_v3 = vmov 0   ;;  %s4679_s30 = sld [smem:[#allocation176_spill]]  ;;  %v598_v5 = vld [vmem:[%s495_s14] sm:$0xf]  ;;  %v612_v8 = vlaneseq }
  0xcb   : > { %2584 = vset.pattern.permute.xlu1 %v2882_v2  ;;  %2583 = vset.pattern.permute.xlu0 %v4608_v3  ;;  %v2884_v6 = vmov 2   ;;  %v2885_v7 = vmov 3   ;;  %s3251_s0 = smul.u32 3, %s2862_s12  ;;  %v508_v9 = vld [vmem:[%s3210_s2] sm:$0xff]  ;;  %v509_v10 = vld [vmem:[%s3210_s2 + $0x8] sm:$0xff]  ;;  %v510_v11 = vld [vmem:[%s3210_s2 + $0x10] sm:$0xff] }
  0xcc   : > { %v511_v12 = vld [vmem:[%s3210_s2 + $0x18] sm:$0xff]  ;;  %v520_v13 = vld [vmem:[%s3223_s24] sm:$0xff]  ;;  %v512_v14 = vunpack.c.l.bf16 %v508_v9  ;;  %v513_v15 = vunpack.c.h.bf16 %v508_v9  ;;  %v521_v16 = vld [vmem:[%s3223_s24 + $0x8] sm:$0xff]  ;;  %v3265_v19 = vshrl.u32 %v612_v8, 7  ;;  %v514_v20 = vunpack.c.l.bf16 %v509_v10  ;;  %p2443_p0 = scmp.ne.s32.totalorder %s2858_s11, 1 }
  0xcd   : > { %s506_s22 = sadd.s32 1, %s3251_s0  ;;  %s505_s16 = sld [smem:[#allocation3 + %s3251_s0]]  ;;  %v540_v17 = vld [vmem:[%s3225_s21] sm:$0xff]  ;;  %v541_v18 = vld [vmem:[%s3225_s21 + $0x8] sm:$0xff]  ;;  %v515_v21 = vunpack.c.h.bf16 %v509_v10  ;;  %v516_v22 = vunpack.c.l.bf16 %v510_v11  ;;  %v517_v23 = vunpack.c.h.bf16 %v510_v11  ;;  %v518_v26 = vunpack.c.l.bf16 %v511_v12 }
  0xce   : > { %s3255_s20 = sld [smem:[#allocation3 + %s506_s22]]  ;;  %v522_v24 = vld [vmem:[%s3223_s24 + $0x10] sm:$0xff]  ;;  %v523_v25 = vld [vmem:[%s3223_s24 + $0x18] sm:$0xff]  ;;  %v519_v27 = vunpack.c.h.bf16 %v511_v12  ;;  %v3269_v28 = vunpack.c.l.bf16 %v520_v13  ;;  %v3271_v29 = vunpack.c.h.bf16 %v520_v13  ;;  %v3273_v30 = vunpack.c.l.bf16 %v521_v16  ;;  %v3284_v36 = vld [vmem:[%s3217_s7] sm:$0xff]  ;;  %s2200_s2 = sadd.s32 (!%p2443_p0), 2, %s3251_s0 }
  0xcf   : > { %vm542_vm1 = vnez %v540_v17  ;;  %vm543_vm2 = vnez %v541_v18  ;;  %v3275_v32 = vunpack.c.h.bf16 %v521_v16  ;;  %v3277_v33 = vunpack.c.l.bf16 %v522_v24  ;;  %4680 = vst [vmem:[#allocation28_spill] sm:$0xff] %v3284_v36  ;;  %v3289_v38 = vld [vmem:[%s3217_s7 + $0x8] sm:$0xff]  ;;  %v3292_v39 = vld [vmem:[%s3217_s7 + $0x10] sm:$0xff]  ;;  %v3295_v40 = vld [vmem:[%s3217_s7 + $0x18] sm:$0xff] }
  0xd0   : > { %v596_v1 = vld [vmem:[%s4678_s19] sm:$0xf]  ;;  %v3279_v34 = vunpack.c.h.bf16 %v522_v24  ;;  %v3281_v35 = vunpack.c.l.bf16 %v523_v25  ;;  %v3286_v37 = vunpack.c.h.bf16 %v523_v25  ;;  %4681 = vst [vmem:[#allocation29_spill] sm:$0xff] %v3289_v38  ;;  %4682 = vst [vmem:[#allocation30_spill] sm:$0xff] %v3292_v39  ;;  %v3299_v42 = vsub.s32 0, %v3265_v19  ;;  %v3305_v44 = vld [vmem:[%s3217_s7 + $0x20] sm:$0xff] }
  0xd1   : > { %983 = vperm.xlu1 %2584, %v596_v1   ;;  %601 = vperm.xlu0 %2583, %v596_v1   ;;  %v597_v4 = vld [vmem:[%s4679_s30] sm:$0xf]  ;;  %4683 = vst [vmem:[#allocation31_spill] sm:$0xff] %v3295_v40  ;;  %v3302_v43 = vsub.s32 4, %v3265_v19  ;;  %4684 = vst [vmem:[#allocation32_spill] sm:$0xff] %v3305_v44  ;;  %v3312_v48 = vsub.s32 1, %v3265_v19 }
  0xd2   : > { %v570_v46 = vsel %vm542_vm1, 16843009, %v4608_v3  ;;  %v571_v47 = vsel %vm543_vm2, 16843009, %v4608_v3  ;;  %v3315_v49 = vld [vmem:[%s3217_s7 + $0x28] sm:$0xff]  ;;  %v3318_v50 = vld [vmem:[%s3217_s7 + $0x30] sm:$0xff] }
  0xd3   : > { %v544_v31 = vstv %s505_s16  ;;  %4685 = vst [vmem:[#allocation33_spill] sm:$0xff] %v3315_v49  ;;  %4686 = vst [vmem:[#allocation34_spill] sm:$0xff] %v3318_v50  ;;  %v539_v51 = vld [vmem:[%s3217_s7 + $0x38] sm:$0xff]  ;;  %v576_v8 = vunpack.c.0.s8 %v571_v47  ;;  %v577_v10 = vunpack.c.1.s8 %v571_v47  ;;  %v578_v11 = vunpack.c.2.s8 %v571_v47 }
  0xd4   : > { %v553_v41 = vstv %s3255_s20  ;;  %v545_v45 = vmul.f32 %v544_v31, %v512_v14  ;;  %v546_v52 = vmul.f32 %v544_v31, %v513_v15  ;;  %v547_v53 = vmul.f32 %v544_v31, %v514_v20 }
  0xd5   : > { %1147 = vperm.xlu1 %2584, %v597_v4   ;;  %774 = vperm.xlu0 %2583, %v597_v4   ;;  %v548_v54 = vmul.f32 %v544_v31, %v515_v21  ;;  %v549_v55 = vmul.f32 %v544_v31, %v516_v22  ;;  %v550_v56 = vmul.f32 %v544_v31, %v517_v23  ;;  %v579_v12 = vunpack.c.3.s8 %v571_v47 }
  0xd6   : > { %v551_v57 = vmul.f32 %v544_v31, %v518_v26  ;;  %v552_v58 = vmul.f32 %v544_v31, %v519_v27  ;;  %v554_v59 = vmul.f32 %v553_v41, %v3284_v36  ;;  %v555_v60 = vmul.f32 %v553_v41, %v3289_v38 }
  0xd7   : > { %v556_v61 = vmul.f32 %v553_v41, %v3292_v39  ;;  %v557_v62 = vmul.f32 %v553_v41, %v3295_v40  ;;  %v558_v63 = vmul.f32 %v553_v41, %v3305_v44  ;;  %v559_v0 = vmul.f32 %v553_v41, %v3315_v49 }
  0xd8   : > { %v561_v2 = vmul.f32 %v553_v41, %v539_v51  ;;  %v562_v9 = vadd.f32 %v554_v59, %v545_v45  ;;  %v563_v13 = vadd.f32 %v555_v60, %v546_v52  ;;  %v4687_v21 = vmov 0 }
  0xd9   : > { %2585 = vset.pattern.permute.xlu1 %v2884_v6  ;;  %963 = vperm.xlu0 %2583, %v598_v5   ;;  %v573_v5 = vunpack.c.1.s8 %v570_v46  ;;  %v564_v14 = vadd.f32 %v556_v61, %v547_v53  ;;  %v565_v15 = vadd.f32 %v557_v62, %v548_v54  ;;  %v566_v16 = vadd.f32 %v558_v63, %v549_v55 }
  0xda   : > { %1343 = vperm.xlu1 %2585, %v596_v1   ;;  %v567_v17 = vadd.f32 %v559_v0, %v550_v56  ;;  %v569_v20 = vadd.f32 %v561_v2, %v552_v58  ;;  %v4690_v22 = vmov 0  ;;  %v4693_v23 = vmov 0 }
  0xdb   : > { %vm3332_vm4 = vcmp.ne.s32.totalorder %v573_v5, 0  ;;  %v4696_v24 = vmov 0  ;;  %vm3344_vm7 = vcmp.ne.s32.totalorder %v576_v8, 0  ;;  %v4699_v25 = vmov 0 }
  0xdc   : > { %v4691_v22 = vsel %vm3332_vm4, 4294967295, %v4690_v22  ;;  %v4700_v25 = vsel %vm3344_vm7, 4294967295, %v4699_v25  ;;  %vm3348_vm8 = vcmp.ne.s32.totalorder %v577_v10, 0  ;;  %v4702_v26 = vmov 0 }
  0xdd   : > { %2586 = vset.pattern.permute.xlu0 %v2884_v6  ;;  %v574_v6 = vunpack.c.2.s8 %v570_v46  ;;  %4692 = vst [vmem:[#allocation36_spill] sm:$0xff] %v4691_v22  ;;  %4701 = vst [vmem:[#allocation39_spill] sm:$0xff] %v4700_v25  ;;  %v4703_v26 = vsel %vm3348_vm8, 4294967295, %v4702_v26  ;;  %vm3352_vm9 = vcmp.ne.s32.totalorder %v578_v11, 0  ;;  %v4705_v27 = vmov 0 }
  0xde   : > { %2587 = vset.pattern.permute.xlu1 %v2885_v7  ;;  %1507 = vperm.xlu0 %2586, %v597_v4   ;;  %4704 = vst [vmem:[#allocation40_spill] sm:$0xff] %v4703_v26  ;;  %v4706_v27 = vsel %vm3352_vm9, 4294967295, %v4705_v27  ;;  %vm3356_vm10 = vcmp.ne.s32.totalorder %v579_v12, 0  ;;  %v4708_v31 = vmov 0  ;;  %v792_v47 = vrot.slane %v3269_v28, %v3302_v43 }
  0xdf   : > { %1703 = vperm.xlu1 %2587, %v596_v1   ;;  %v560_v1 = vmul.f32 %v553_v41, %v3318_v50  ;;  %vm3336_vm5 = vcmp.ne.s32.totalorder %v574_v6, 0  ;;  %4707 = vst [vmem:[#allocation41_spill] sm:$0xff] %v4706_v27  ;;  %v4709_v31 = vsel %vm3356_vm10, 4294967295, %v4708_v31  ;;  %v3361_v41 = vsub.s32 5, %v3265_v19 }
  0xe0   : > { %v4694_v23 = vsel %vm3336_vm5, 4294967295, %v4693_v23  ;;  %4710 = vst [vmem:[#allocation42_spill] sm:$0xff] %v4709_v31  ;;  %v796_v51 = vrot.slane %v3271_v29, %v3299_v42  ;;  %v3377_v52 = vsel %vm3332_vm4, %v3271_v29, %v563_v13  ;;  %v3382_v53 = vsel %vm3336_vm5, %v3273_v30, %v564_v14 }
  0xe1   : > { %v568_v18 = vadd.f32 %v560_v1, %v551_v57  ;;  %4695 = vst [vmem:[#allocation37_spill] sm:$0xff] %v4694_v23  ;;  %v3392_v55 = vsel %vm3344_vm7, %v3277_v33, %v566_v16  ;;  %v3397_v56 = vsel %vm3348_vm8, %v3279_v34, %v567_v17  ;;  %v3407_v58 = vsel %vm3356_vm10, %v3286_v37, %v569_v20 }
  0xe2   : > { %2588 = vset.pattern.permute.xlu0 %v2885_v7  ;;  %v575_v7 = vunpack.c.3.s8 %v570_v46  ;;  %v623_v61 = vrot.slane %v3377_v52, %v3299_v42  ;;  %v627_v62 = vrot.slane %v3377_v52, %v3302_v43  ;;  %v631_v63 = vrot.slane %v3382_v53, %v3299_v42 }
  0xe3   : > { %1867 = vperm.xlu1 %2587, %v597_v4   ;;  %v572_v4 = vunpack.c.0.s8 %v570_v46  ;;  %v788_v46 = vrot.slane %v3269_v28, %v3299_v42  ;;  %v3402_v57 = vsel %vm3352_vm9, %v3281_v35, %v568_v18  ;;  %v635_v0 = vrot.slane %v3382_v53, %v3302_v43 }
  0xe4   : > { %vm3340_vm6 = vcmp.ne.s32.totalorder %v575_v7, 0  ;;  %v651_v5 = vrot.slane %v3392_v55, %v3302_v43  ;;  %v655_v6 = vrot.slane %v3397_v56, %v3299_v42  ;;  %v659_v7 = vrot.slane %v3397_v56, %v3302_v43 }
  0xe5   : > { %vm3328_vm3 = vcmp.ne.s32.totalorder %v572_v4, 0  ;;  %v4697_v24 = vsel %vm3340_vm6, 4294967295, %v4696_v24  ;;  %v3387_v54 = vsel %vm3340_vm6, %v3275_v32, %v565_v15  ;;  %v647_v4 = vrot.slane %v3392_v55, %v3299_v42 }
  0xe6   : > { %v4688_v21 = vsel %vm3328_vm3, 4294967295, %v4687_v21  ;;  %4698 = vst [vmem:[#allocation38_spill] sm:$0xff] %v4697_v24  ;;  %v3366_v45 = vsel %vm3328_vm3, %v3269_v28, %v562_v9  ;;  %v639_v1 = vrot.slane %v3387_v54, %v3299_v42  ;;  %v643_v2 = vrot.slane %v3387_v54, %v3302_v43 }
  0xe7   : > { %4689 = vst [vmem:[#allocation35_spill] sm:$0xff] %v4688_v21  ;;  %v615_v59 = vrot.slane %v3366_v45, %v3299_v42  ;;  %v619_v60 = vrot.slane %v3366_v45, %v3302_v43  ;;  %v663_v8 = vrot.slane %v3402_v57, %v3299_v42  ;;  %v667_v9 = vrot.slane %v3402_v57, %v3302_v43 }
  0xe8   : > { %v671_v10 = vrot.slane %v3407_v58, %v3299_v42  ;;  %v675_v11 = vrot.slane %v3407_v58, %v3302_v43  ;;  %v3448_v14 = vrot.slane %v623_v61, %v3299_v42  ;;  %v3451_v15 = vrot.slane %v627_v62, %v3299_v42 }
  0xe9   : > { %v3442_v12 = vrot.slane %v615_v59, %v3299_v42  ;;  %v3445_v13 = vrot.slane %v619_v60, %v3299_v42  ;;  %v3454_v16 = vrot.slane %v631_v63, %v3299_v42  ;;  %v3457_v17 = vrot.slane %v635_v0, %v3299_v42 }
  0xea   : > { %v3460_v18 = vrot.slane %v639_v1, %v3299_v42  ;;  %v3463_v20 = vrot.slane %v643_v2, %v3299_v42  ;;  %v3466_v59 = vrot.slane %v647_v4, %v3299_v42  ;;  %v3469_v60 = vrot.slane %v651_v5, %v3299_v42 }
  0xeb   : > { %v3472_v61 = vrot.slane %v655_v6, %v3299_v42  ;;  %v3475_v62 = vrot.slane %v659_v7, %v3299_v42  ;;  %v3478_v63 = vrot.slane %v663_v8, %v3299_v42  ;;  %v3481_v0 = vrot.slane %v667_v9, %v3299_v42 }
  0xec   : > { %4711 = vst [vmem:[#allocation43_spill] sm:$0xff] %v3460_v18  ;;  %4712 = vst [vmem:[#allocation44_spill] sm:$0xff] %v3463_v20  ;;  %v3484_v1 = vrot.slane %v671_v10, %v3299_v42  ;;  %v3487_v2 = vrot.slane %v675_v11, %v3299_v42  ;;  %v800_v4 = vrot.slane %v3271_v29, %v3302_v43  ;;  %vm2159_vm13 = vcmask 1043456  }
  0xed   : > { %4713 = vst [vmem:[#allocation45_spill] sm:$0xff] %v3466_v59  ;;  %4714 = vst [vmem:[#allocation46_spill] sm:$0xff] %v3469_v60  ;;  %v804_v5 = vrot.slane %v3273_v30, %v3299_v42  ;;  %v808_v6 = vrot.slane %v3273_v30, %v3302_v43  ;;  %v812_v7 = vrot.slane %v3275_v32, %v3299_v42 }
  0xee   : > { %4715 = vst [vmem:[#allocation47_spill] sm:$0xff] %v3472_v61  ;;  %4716 = vst [vmem:[#allocation48_spill] sm:$0xff] %v3475_v62  ;;  %v816_v8 = vrot.slane %v3275_v32, %v3302_v43  ;;  %v820_v9 = vrot.slane %v3277_v33, %v3299_v42  ;;  %v824_v10 = vrot.slane %v3277_v33, %v3302_v43 }
  0xef   : > { %4717 = vst [vmem:[#allocation49_spill] sm:$0xff] %v3478_v63  ;;  %4718 = vst [vmem:[#allocation50_spill] sm:$0xff] %v3481_v0  ;;  %v828_v11 = vrot.slane %v3279_v34, %v3299_v42  ;;  %v832_v3 = vrot.slane %v3279_v34, %v3302_v43  ;;  %v844_v0 = vrot.slane %v3286_v37, %v3299_v42 }
  0xf0   : > { %4719 = vst [vmem:[#allocation51_spill] sm:$0xff] %v3484_v1  ;;  %4720 = vst [vmem:[#allocation52_spill] sm:$0xff] %v3487_v2  ;;  %v836_v2 = vrot.slane %v3281_v35, %v3299_v42  ;;  %v840_v1 = vrot.slane %v3281_v35, %v3302_v43  ;;  %v848_v63 = vrot.slane %v3286_v37, %v3302_v43 }
  0xf1   : > { %v3516_v62 = vrot.slane %v788_v46, %v3299_v42  ;;  %v3519_v61 = vrot.slane %v792_v47, %v3299_v42  ;;  %v3522_v60 = vrot.slane %v796_v51, %v3299_v42  ;;  %v3525_v59 = vrot.slane %v800_v4, %v3299_v42 }
  0xf2   : > { %v3528_v20 = vrot.slane %v804_v5, %v3299_v42  ;;  %v3531_v18 = vrot.slane %v808_v6, %v3299_v42  ;;  %v3534_v43 = vrot.slane %v812_v7, %v3299_v42  ;;  %v3537_v46 = vrot.slane %v816_v8, %v3299_v42 }
  0xf3   : > { %4721 = vst [vmem:[#allocation53_spill] sm:$0xff] %v3516_v62  ;;  %4722 = vst [vmem:[#allocation54_spill] sm:$0xff] %v3519_v61  ;;  %v3540_v47 = vrot.slane %v820_v9, %v3299_v42  ;;  %v3543_v51 = vrot.slane %v824_v10, %v3299_v42  ;;  %v3546_v4 = vrot.slane %v828_v11, %v3299_v42 }
  0xf4   : > { %4723 = vst [vmem:[#allocation55_spill] sm:$0xff] %v3522_v60  ;;  %4724 = vst [vmem:[#allocation56_spill] sm:$0xff] %v3525_v59  ;;  %v3549_v5 = vrot.slane %v832_v3, %v3299_v42  ;;  %v3552_v6 = vrot.slane %v836_v2, %v3299_v42  ;;  %v3555_v7 = vrot.slane %v840_v1, %v3299_v42 }
  0xf5   : > { %4725 = vst [vmem:[#allocation57_spill] sm:$0xff] %v3528_v20  ;;  %4726 = vst [vmem:[#allocation58_spill] sm:$0xff] %v3531_v18  ;;  %v3558_v8 = vrot.slane %v844_v0, %v3299_v42  ;;  %v3561_v9 = vrot.slane %v848_v63, %v3299_v42  ;;  %v989_v10 = vrot.slane %v3366_v45, %v3312_v48 }
  0xf6   : > { %4727 = vst [vmem:[#allocation59_spill] sm:$0xff] %v3534_v43  ;;  %4728 = vst [vmem:[#allocation60_spill] sm:$0xff] %v3537_v46  ;;  %v993_v11 = vrot.slane %v3366_v45, %v3361_v41  ;;  %v997_v3 = vrot.slane %v3377_v52, %v3312_v48  ;;  %v1001_v2 = vrot.slane %v3377_v52, %v3361_v41  ;;  %v4849_v39 = vld [vmem:[#allocation50_spill] sm:$0xff] }
  0xf7   : > { %4729 = vst [vmem:[#allocation61_spill] sm:$0xff] %v3540_v47  ;;  %4730 = vst [vmem:[#allocation62_spill] sm:$0xff] %v3543_v51  ;;  %v1005_v1 = vrot.slane %v3382_v53, %v3312_v48  ;;  %v1009_v0 = vrot.slane %v3382_v53, %v3361_v41  ;;  %v1013_v42 = vrot.slane %v3387_v54, %v3312_v48  ;;  %v4851_v22 = vld [vmem:[#allocation52_spill] sm:$0xff] }
  0xf8   : > { %4731 = vst [vmem:[#allocation63_spill] sm:$0xff] %v3546_v4  ;;  %4732 = vst [vmem:[#allocation64_spill] sm:$0xff] %v3549_v5  ;;  %v1017_v63 = vrot.slane %v3387_v54, %v3361_v41  ;;  %v1037_v5 = vrot.slane %v3402_v57, %v3312_v48  ;;  %v1041_v4 = vrot.slane %v3402_v57, %v3361_v41 }
  0xf9   : > { %4733 = vst [vmem:[#allocation65_spill] sm:$0xff] %v3552_v6  ;;  %4734 = vst [vmem:[#allocation66_spill] sm:$0xff] %v3555_v7  ;;  %v1029_v7 = vrot.slane %v3397_v56, %v3312_v48  ;;  %v1033_v6 = vrot.slane %v3397_v56, %v3361_v41  ;;  %v1045_v51 = vrot.slane %v3407_v58, %v3312_v48 }
  0xfa   : > { %4735 = vst [vmem:[#allocation67_spill] sm:$0xff] %v3558_v8  ;;  %4736 = vst [vmem:[#allocation68_spill] sm:$0xff] %v3561_v9  ;;  %v1021_v9 = vrot.slane %v3392_v55, %v3312_v48  ;;  %v1025_v8 = vrot.slane %v3392_v55, %v3361_v41  ;;  %v1049_v47 = vrot.slane %v3407_v58, %v3361_v41 }
  0xfb   : > { %v3596_v46 = vrot.slane %v989_v10, %v3312_v48  ;;  %v3599_v43 = vrot.slane %v993_v11, %v3312_v48  ;;  %v3602_v18 = vrot.slane %v997_v3, %v3312_v48  ;;  %v3605_v20 = vrot.slane %v1001_v2, %v3312_v48  ;;  %v4854_v21 = vld [vmem:[#allocation55_spill] sm:$0xff]  ;;  %v4855_v38 = vld [vmem:[#allocation56_spill] sm:$0xff] }
  0xfc   : > { %v3608_v59 = vrot.slane %v1005_v1, %v3312_v48  ;;  %v3611_v60 = vrot.slane %v1009_v0, %v3312_v48  ;;  %v3614_v61 = vrot.slane %v1013_v42, %v3312_v48  ;;  %v3617_v10 = vrot.slane %v1017_v63, %v3312_v48 }
  0xfd   : > { %4737 = vst [vmem:[#allocation69_spill] sm:$0xff] %v3596_v46  ;;  %4738 = vst [vmem:[#allocation70_spill] sm:$0xff] %v3599_v43  ;;  %v3620_v11 = vrot.slane %v1021_v9, %v3312_v48  ;;  %v3623_v3 = vrot.slane %v1025_v8, %v3312_v48  ;;  %v3626_v2 = vrot.slane %v1029_v7, %v3312_v48 }
  0xfe   : > { %4739 = vst [vmem:[#allocation71_spill] sm:$0xff] %v3602_v18  ;;  %4740 = vst [vmem:[#allocation72_spill] sm:$0xff] %v3605_v20  ;;  %v3629_v1 = vrot.slane %v1033_v6, %v3312_v48  ;;  %v3632_v0 = vrot.slane %v1037_v5, %v3312_v48  ;;  %v3635_v42 = vrot.slane %v1041_v4, %v3312_v48  ;;  %v4860_v36 = vld [vmem:[#allocation61_spill] sm:$0xff] }
  0xff   : > { %4741 = vst [vmem:[#allocation73_spill] sm:$0xff] %v3608_v59  ;;  %4742 = vst [vmem:[#allocation74_spill] sm:$0xff] %v3611_v60  ;;  %v3638_v63 = vrot.slane %v1045_v51, %v3312_v48  ;;  %v3641_v9 = vrot.slane %v1049_v47, %v3312_v48  ;;  %v1153_v8 = vrot.slane %v3269_v28, %v3312_v48 }
 0x100   : > { %4743 = vst [vmem:[#allocation75_spill] sm:$0xff] %v3614_v61  ;;  %4744 = vst [vmem:[#allocation76_spill] sm:$0xff] %v3617_v10  ;;  %v1157_v7 = vrot.slane %v3269_v28, %v3361_v41  ;;  %v1161_v6 = vrot.slane %v3271_v29, %v3312_v48  ;;  %v1165_v5 = vrot.slane %v3271_v29, %v3361_v41 }
 0x101   : > { %4745 = vst [vmem:[#allocation77_spill] sm:$0xff] %v3620_v11  ;;  %4746 = vst [vmem:[#allocation78_spill] sm:$0xff] %v3623_v3  ;;  %v1169_v4 = vrot.slane %v3273_v30, %v3312_v48  ;;  %v1173_v51 = vrot.slane %v3273_v30, %v3361_v41  ;;  %v1177_v47 = vrot.slane %v3275_v32, %v3312_v48 }
 0x102   : > { %4747 = vst [vmem:[#allocation79_spill] sm:$0xff] %v3626_v2  ;;  %4748 = vst [vmem:[#allocation80_spill] sm:$0xff] %v3629_v1  ;;  %v1197_v1 = vrot.slane %v3279_v34, %v3361_v41  ;;  %v1201_v2 = vrot.slane %v3281_v35, %v3312_v48  ;;  %v1205_v3 = vrot.slane %v3281_v35, %v3361_v41 }
 0x103   : > { %4749 = vst [vmem:[#allocation81_spill] sm:$0xff] %v3632_v0  ;;  %4750 = vst [vmem:[#allocation82_spill] sm:$0xff] %v3635_v42  ;;  %v1189_v42 = vrot.slane %v3277_v33, %v3361_v41  ;;  %v1193_v0 = vrot.slane %v3279_v34, %v3312_v48  ;;  %v1209_v11 = vrot.slane %v3286_v37, %v3312_v48 }
 0x104   : > { %4751 = vst [vmem:[#allocation83_spill] sm:$0xff] %v3638_v63  ;;  %4752 = vst [vmem:[#allocation84_spill] sm:$0xff] %v3641_v9  ;;  %v1181_v9 = vrot.slane %v3275_v32, %v3361_v41  ;;  %v1185_v63 = vrot.slane %v3277_v33, %v3312_v48  ;;  %v1213_v10 = vrot.slane %v3286_v37, %v3361_v41  ;;  %v3694_v41 = vsub.s32 2, %v3265_v19 }
 0x105   : > { %v3676_v61 = vrot.slane %v1153_v8, %v3312_v48  ;;  %v3679_v60 = vrot.slane %v1157_v7, %v3312_v48  ;;  %v3682_v59 = vrot.slane %v1161_v6, %v3312_v48  ;;  %v3685_v20 = vrot.slane %v1165_v5, %v3312_v48 }
 0x106   : > { %v3688_v18 = vrot.slane %v1169_v4, %v3312_v48  ;;  %v3691_v43 = vrot.slane %v1173_v51, %v3312_v48  ;;  %v3697_v8 = vsub.s32 6, %v3265_v19  ;;  %v3700_v7 = vrot.slane %v1177_v47, %v3312_v48 }
 0x107   : > { %4753 = vst [vmem:[#allocation85_spill] sm:$0xff] %v3676_v61  ;;  %4754 = vst [vmem:[#allocation86_spill] sm:$0xff] %v3679_v60  ;;  %v3703_v6 = vrot.slane %v1181_v9, %v3312_v48  ;;  %v3706_v5 = vrot.slane %v1185_v63, %v3312_v48  ;;  %v3709_v4 = vrot.slane %v1189_v42, %v3312_v48  ;;  %v3730_v42 = vsub.s32 3, %v3265_v19 }
 0x108   : > { %4755 = vst [vmem:[#allocation87_spill] sm:$0xff] %v3682_v59  ;;  %4756 = vst [vmem:[#allocation88_spill] sm:$0xff] %v3685_v20  ;;  %v3712_v51 = vrot.slane %v1193_v0, %v3312_v48  ;;  %v3721_v47 = vrot.slane %v1205_v3, %v3312_v48  ;;  %v3724_v9 = vrot.slane %v1209_v11, %v3312_v48  ;;  %v3733_v0 = vsub.s32 7, %v3265_v19 }
 0x109   : > { %4757 = vst [vmem:[#allocation89_spill] sm:$0xff] %v3688_v18  ;;  %4758 = vst [vmem:[#allocation90_spill] sm:$0xff] %v3691_v43  ;;  %v3715_v43 = vrot.slane %v1197_v1, %v3312_v48  ;;  %v3718_v18 = vrot.slane %v1201_v2, %v3312_v48  ;;  %v3727_v63 = vrot.slane %v1213_v10, %v3312_v48 }
 0x10a   : > { %4759 = vst [vmem:[#allocation91_spill] sm:$0xff] %v3700_v7  ;;  %4760 = vst [vmem:[#allocation92_spill] sm:$0xff] %v3703_v6  ;;  %v1349_v1 = vrot.slane %v3366_v45, %v3694_v41  ;;  %v1353_v2 = vrot.slane %v3366_v45, %v3697_v8  ;;  %v1357_v3 = vrot.slane %v3377_v52, %v3694_v41 }
 0x10b   : > { %4761 = vst [vmem:[#allocation93_spill] sm:$0xff] %v3706_v5  ;;  %4762 = vst [vmem:[#allocation94_spill] sm:$0xff] %v3709_v4  ;;  %v1361_v11 = vrot.slane %v3377_v52, %v3697_v8  ;;  %v1365_v48 = vrot.slane %v3382_v53, %v3694_v41  ;;  %v1369_v10 = vrot.slane %v3382_v53, %v3697_v8 }
 0x10c   : > { %4763 = vst [vmem:[#allocation95_spill] sm:$0xff] %v3712_v51  ;;  %4764 = vst [vmem:[#allocation96_spill] sm:$0xff] %v3715_v43  ;;  %v1373_v19 = vrot.slane %v3387_v54, %v3694_v41  ;;  %v1393_v43 = vrot.slane %v3397_v56, %v3697_v8  ;;  %v1397_v51 = vrot.slane %v3402_v57, %v3694_v41 }
 0x10d   : > { %4765 = vst [vmem:[#allocation97_spill] sm:$0xff] %v3718_v18  ;;  %4766 = vst [vmem:[#allocation98_spill] sm:$0xff] %v3721_v47  ;;  %v1385_v47 = vrot.slane %v3392_v55, %v3697_v8  ;;  %v1389_v18 = vrot.slane %v3397_v56, %v3694_v41  ;;  %v1401_v4 = vrot.slane %v3402_v57, %v3697_v8 }
 0x10e   : > { %4767 = vst [vmem:[#allocation99_spill] sm:$0xff] %v3724_v9  ;;  %4768 = vst [vmem:[#allocation100_spill] sm:$0xff] %v3727_v63  ;;  %v1377_v63 = vrot.slane %v3387_v54, %v3697_v8  ;;  %v1381_v9 = vrot.slane %v3392_v55, %v3694_v41  ;;  %v1405_v5 = vrot.slane %v3407_v58, %v3694_v41 }
 0x10f   : > { %v1409_v6 = vrot.slane %v3407_v58, %v3697_v8  ;;  %v3768_v7 = vrot.slane %v1349_v1, %v3694_v41  ;;  %v3771_v20 = vrot.slane %v1353_v2, %v3694_v41  ;;  %v3774_v59 = vrot.slane %v1357_v3, %v3694_v41 }
 0x110   : > { %v3777_v60 = vrot.slane %v1361_v11, %v3694_v41  ;;  %v3780_v61 = vrot.slane %v1365_v48, %v3694_v41  ;;  %v3783_v46 = vrot.slane %v1369_v10, %v3694_v41  ;;  %v3786_v62 = vrot.slane %v1373_v19, %v3694_v41 }
 0x111   : > { %4769 = vst [vmem:[#allocation101_spill] sm:$0xff] %v3768_v7  ;;  %4770 = vst [vmem:[#allocation102_spill] sm:$0xff] %v3771_v20  ;;  %v3789_v1 = vrot.slane %v1377_v63, %v3694_v41  ;;  %v3792_v2 = vrot.slane %v1381_v9, %v3694_v41  ;;  %v3795_v3 = vrot.slane %v1385_v47, %v3694_v41 }
 0x112   : > { %4771 = vst [vmem:[#allocation103_spill] sm:$0xff] %v3774_v59  ;;  %4772 = vst [vmem:[#allocation104_spill] sm:$0xff] %v3777_v60  ;;  %v3798_v11 = vrot.slane %v1389_v18, %v3694_v41  ;;  %v3801_v48 = vrot.slane %v1393_v43, %v3694_v41  ;;  %v3804_v10 = vrot.slane %v1397_v51, %v3694_v41 }
 0x113   : > { %4773 = vst [vmem:[#allocation105_spill] sm:$0xff] %v3780_v61  ;;  %4774 = vst [vmem:[#allocation106_spill] sm:$0xff] %v3783_v46  ;;  %v3807_v19 = vrot.slane %v1401_v4, %v3694_v41  ;;  %v3810_v63 = vrot.slane %v1405_v5, %v3694_v41  ;;  %v3813_v9 = vrot.slane %v1409_v6, %v3694_v41 }
 0x114   : > { %4775 = vst [vmem:[#allocation107_spill] sm:$0xff] %v3786_v62  ;;  %4776 = vst [vmem:[#allocation108_spill] sm:$0xff] %v3789_v1  ;;  %v1513_v47 = vrot.slane %v3269_v28, %v3694_v41  ;;  %v1517_v18 = vrot.slane %v3269_v28, %v3697_v8  ;;  %v1521_v43 = vrot.slane %v3271_v29, %v3694_v41 }
 0x115   : > { %4777 = vst [vmem:[#allocation109_spill] sm:$0xff] %v3792_v2  ;;  %4778 = vst [vmem:[#allocation110_spill] sm:$0xff] %v3795_v3  ;;  %v1525_v51 = vrot.slane %v3271_v29, %v3697_v8  ;;  %v1529_v4 = vrot.slane %v3273_v30, %v3694_v41  ;;  %v1533_v5 = vrot.slane %v3273_v30, %v3697_v8 }
 0x116   : > { %4779 = vst [vmem:[#allocation111_spill] sm:$0xff] %v3798_v11  ;;  %4780 = vst [vmem:[#allocation112_spill] sm:$0xff] %v3801_v48  ;;  %v1537_v6 = vrot.slane %v3275_v32, %v3694_v41  ;;  %v1557_v48 = vrot.slane %v3279_v34, %v3697_v8  ;;  %v1561_v11 = vrot.slane %v3281_v35, %v3694_v41 }
 0x117   : > { %4781 = vst [vmem:[#allocation113_spill] sm:$0xff] %v3804_v10  ;;  %4782 = vst [vmem:[#allocation114_spill] sm:$0xff] %v3807_v19  ;;  %v1549_v19 = vrot.slane %v3277_v33, %v3697_v8  ;;  %v1553_v10 = vrot.slane %v3279_v34, %v3694_v41  ;;  %v1565_v3 = vrot.slane %v3281_v35, %v3697_v8 }
 0x118   : > { %4783 = vst [vmem:[#allocation115_spill] sm:$0xff] %v3810_v63  ;;  %4784 = vst [vmem:[#allocation116_spill] sm:$0xff] %v3813_v9  ;;  %v1541_v9 = vrot.slane %v3275_v32, %v3697_v8  ;;  %v1545_v63 = vrot.slane %v3277_v33, %v3694_v41  ;;  %v1569_v2 = vrot.slane %v3286_v37, %v3694_v41 }
 0x119   : > { %v1573_v1 = vrot.slane %v3286_v37, %v3697_v8  ;;  %v3848_v62 = vrot.slane %v1513_v47, %v3694_v41  ;;  %v3851_v46 = vrot.slane %v1517_v18, %v3694_v41  ;;  %v3854_v61 = vrot.slane %v1521_v43, %v3694_v41 }
 0x11a   : > { %v3857_v60 = vrot.slane %v1525_v51, %v3694_v41  ;;  %v3860_v59 = vrot.slane %v1529_v4, %v3694_v41  ;;  %v3863_v20 = vrot.slane %v1533_v5, %v3694_v41  ;;  %v3866_v8 = vrot.slane %v1537_v6, %v3694_v41 }
 0x11b   : > { %4785 = vst [vmem:[#allocation117_spill] sm:$0xff] %v3848_v62  ;;  %4786 = vst [vmem:[#allocation118_spill] sm:$0xff] %v3851_v46  ;;  %v3869_v47 = vrot.slane %v1541_v9, %v3694_v41  ;;  %v3872_v18 = vrot.slane %v1545_v63, %v3694_v41  ;;  %v3875_v43 = vrot.slane %v1549_v19, %v3694_v41 }
 0x11c   : > { %4787 = vst [vmem:[#allocation119_spill] sm:$0xff] %v3854_v61  ;;  %4788 = vst [vmem:[#allocation120_spill] sm:$0xff] %v3857_v60  ;;  %v3878_v51 = vrot.slane %v1553_v10, %v3694_v41  ;;  %v3881_v4 = vrot.slane %v1557_v48, %v3694_v41  ;;  %v3884_v5 = vrot.slane %v1561_v11, %v3694_v41 }
 0x11d   : > { %4789 = vst [vmem:[#allocation121_spill] sm:$0xff] %v3860_v59  ;;  %4790 = vst [vmem:[#allocation122_spill] sm:$0xff] %v3863_v20  ;;  %v3887_v6 = vrot.slane %v1565_v3, %v3694_v41  ;;  %v3890_v9 = vrot.slane %v1569_v2, %v3694_v41  ;;  %v3893_v63 = vrot.slane %v1573_v1, %v3694_v41  ;;  %v4902_v20 = vld [vmem:[#allocation99_spill] sm:$0xff]  ;;  %v4903_v59 = vld [vmem:[#allocation100_spill] sm:$0xff] }
 0x11e   : > { %4791 = vst [vmem:[#allocation123_spill] sm:$0xff] %v3866_v8  ;;  %4792 = vst [vmem:[#allocation124_spill] sm:$0xff] %v3869_v47  ;;  %v1709_v19 = vrot.slane %v3366_v45, %v3730_v42  ;;  %v1713_v10 = vrot.slane %v3366_v45, %v3733_v0  ;;  %v1717_v48 = vrot.slane %v3377_v52, %v3730_v42  ;;  %v4900_v47 = vld [vmem:[#allocation97_spill] sm:$0xff]  ;;  %v4901_v8 = vld [vmem:[#allocation98_spill] sm:$0xff] }
 0x11f   : > { %4793 = vst [vmem:[#allocation125_spill] sm:$0xff] %v3872_v18  ;;  %4794 = vst [vmem:[#allocation126_spill] sm:$0xff] %v3875_v43  ;;  %v1721_v11 = vrot.slane %v3377_v52, %v3733_v0  ;;  %v1725_v3 = vrot.slane %v3382_v53, %v3730_v42  ;;  %v1729_v2 = vrot.slane %v3382_v53, %v3733_v0  ;;  %v4899_v18 = vld [vmem:[#allocation96_spill] sm:$0xff] }
 0x120   : > { %4795 = vst [vmem:[#allocation127_spill] sm:$0xff] %v3878_v51  ;;  %4796 = vst [vmem:[#allocation128_spill] sm:$0xff] %v3881_v4  ;;  %v1733_v41 = vrot.slane %v3387_v54, %v3730_v42  ;;  %v1737_v1 = vrot.slane %v3387_v54, %v3733_v0  ;;  %v1741_v45 = vrot.slane %v3392_v55, %v3730_v42 }
 0x121   : > { %4797 = vst [vmem:[#allocation129_spill] sm:$0xff] %v3884_v5  ;;  %4798 = vst [vmem:[#allocation130_spill] sm:$0xff] %v3887_v6  ;;  %v1749_v52 = vrot.slane %v3397_v56, %v3730_v42  ;;  %v1757_v53 = vrot.slane %v3402_v57, %v3730_v42  ;;  %v1761_v6 = vrot.slane %v3402_v57, %v3733_v0 }
 0x122   : > { %4799 = vst [vmem:[#allocation131_spill] sm:$0xff] %v3890_v9  ;;  %4800 = vst [vmem:[#allocation132_spill] sm:$0xff] %v3893_v63  ;;  %v1745_v63 = vrot.slane %v3392_v55, %v3733_v0  ;;  %v1753_v9 = vrot.slane %v3397_v56, %v3733_v0  ;;  %v1765_v54 = vrot.slane %v3407_v58, %v3730_v42 }
 0x123   : > { %v1769_v5 = vrot.slane %v3407_v58, %v3733_v0  ;;  %v3928_v55 = vrot.slane %v1709_v19, %v3730_v42  ;;  %v3931_v4 = vrot.slane %v1713_v10, %v3730_v42  ;;  %v3934_v56 = vrot.slane %v1717_v48, %v3730_v42 }
 0x124   : > { %v3937_v51 = vrot.slane %v1721_v11, %v3730_v42  ;;  %v3940_v57 = vrot.slane %v1725_v3, %v3730_v42  ;;  %v3943_v43 = vrot.slane %v1729_v2, %v3730_v42  ;;  %v3946_v58 = vrot.slane %v1733_v41, %v3730_v42 }
 0x125   : > { %4801 = vst [vmem:[#allocation133_spill] sm:$0xff] %v3928_v55  ;;  %4802 = vst [vmem:[#allocation134_spill] sm:$0xff] %v3931_v4  ;;  %v3949_v19 = vrot.slane %v1737_v1, %v3730_v42  ;;  %v3952_v10 = vrot.slane %v1741_v45, %v3730_v42  ;;  %v3955_v48 = vrot.slane %v1745_v63, %v3730_v42 }
 0x126   : > { %4803 = vst [vmem:[#allocation135_spill] sm:$0xff] %v3934_v56  ;;  %4804 = vst [vmem:[#allocation136_spill] sm:$0xff] %v3937_v51  ;;  %v3958_v11 = vrot.slane %v1749_v52, %v3730_v42  ;;  %v3961_v3 = vrot.slane %v1753_v9, %v3730_v42  ;;  %v3964_v2 = vrot.slane %v1757_v53, %v3730_v42 }
 0x127   : > { %4805 = vst [vmem:[#allocation137_spill] sm:$0xff] %v3940_v57  ;;  %4806 = vst [vmem:[#allocation138_spill] sm:$0xff] %v3943_v43  ;;  %v3967_v41 = vrot.slane %v1761_v6, %v3730_v42  ;;  %v3970_v1 = vrot.slane %v1765_v54, %v3730_v42  ;;  %v3973_v45 = vrot.slane %v1769_v5, %v3730_v42  ;;  %v4865_v43 = vld [vmem:[#allocation66_spill] sm:$0xff] }
 0x128   : > { %4807 = vst [vmem:[#allocation139_spill] sm:$0xff] %v3946_v58  ;;  %4808 = vst [vmem:[#allocation140_spill] sm:$0xff] %v3949_v19  ;;  %v1873_v63 = vrot.slane %v3269_v28, %v3730_v42  ;;  %v1877_v52 = vrot.slane %v3269_v28, %v3733_v0  ;;  %v1881_v9 = vrot.slane %v3271_v29, %v3730_v42  ;;  %v4859_v19 = vld [vmem:[#allocation60_spill] sm:$0xff] }
 0x129   : > { %4809 = vst [vmem:[#allocation141_spill] sm:$0xff] %v3952_v10  ;;  %4810 = vst [vmem:[#allocation142_spill] sm:$0xff] %v3955_v48  ;;  %v1885_v53 = vrot.slane %v3271_v29, %v3733_v0  ;;  %v1889_v6 = vrot.slane %v3273_v30, %v3730_v42  ;;  %v1893_v54 = vrot.slane %v3273_v30, %v3733_v0  ;;  %v4863_v58 = vld [vmem:[#allocation64_spill] sm:$0xff] }
 0x12a   : > { %4811 = vst [vmem:[#allocation143_spill] sm:$0xff] %v3958_v11  ;;  %4812 = vst [vmem:[#allocation144_spill] sm:$0xff] %v3961_v3  ;;  %v1897_v5 = vrot.slane %v3275_v32, %v3730_v42  ;;  %v1905_v28 = vrot.slane %v3277_v33, %v3730_v42  ;;  %v1913_v29 = vrot.slane %v3279_v34, %v3730_v42 }
 0x12b   : > { %4813 = vst [vmem:[#allocation145_spill] sm:$0xff] %v3964_v2  ;;  %4814 = vst [vmem:[#allocation146_spill] sm:$0xff] %v3967_v41  ;;  %v1917_v41 = vrot.slane %v3279_v34, %v3733_v0  ;;  %v1921_v30 = vrot.slane %v3281_v35, %v3730_v42  ;;  %v1925_v2 = vrot.slane %v3281_v35, %v3733_v0 }
 0x12c   : > { %4815 = vst [vmem:[#allocation147_spill] sm:$0xff] %v3970_v1  ;;  %4816 = vst [vmem:[#allocation148_spill] sm:$0xff] %v3973_v45  ;;  %v1901_v45 = vrot.slane %v3275_v32, %v3733_v0  ;;  %v1909_v1 = vrot.slane %v3277_v33, %v3733_v0  ;;  %v1929_v32 = vrot.slane %v3286_v37, %v3730_v42 }
 0x12d   : > { %v1933_v3 = vrot.slane %v3286_v37, %v3733_v0  ;;  %v4008_v33 = vrot.slane %v1873_v63, %v3730_v42  ;;  %v4011_v11 = vrot.slane %v1877_v52, %v3730_v42  ;;  %v4014_v34 = vrot.slane %v1881_v9, %v3730_v42 }
 0x12e   : > { %v4017_v48 = vrot.slane %v1885_v53, %v3730_v42  ;;  %v4020_v35 = vrot.slane %v1889_v6, %v3730_v42  ;;  %v4023_v10 = vrot.slane %v1893_v54, %v3730_v42  ;;  %v4026_v37 = vrot.slane %v1897_v5, %v3730_v42 }
 0x12f   : > { %4817 = vst [vmem:[#allocation149_spill] sm:$0xff] %v4008_v33  ;;  %4818 = vst [vmem:[#allocation150_spill] sm:$0xff] %v4011_v11  ;;  %v4029_v0 = vrot.slane %v1901_v45, %v3730_v42  ;;  %v4032_v63 = vrot.slane %v1905_v28, %v3730_v42  ;;  %v4035_v52 = vrot.slane %v1909_v1, %v3730_v42  ;;  %v4897_v33 = vld [vmem:[#allocation94_spill] sm:$0xff] }
 0x130   : > { %4819 = vst [vmem:[#allocation151_spill] sm:$0xff] %v4014_v34  ;;  %4820 = vst [vmem:[#allocation152_spill] sm:$0xff] %v4017_v48  ;;  %v4038_v9 = vrot.slane %v1913_v29, %v3730_v42  ;;  %v4041_v53 = vrot.slane %v1917_v41, %v3730_v42  ;;  %v4044_v6 = vrot.slane %v1921_v30, %v3730_v42  ;;  %v4833_v30 = vmov 0   ;;  %v4847_v41 = vld [vmem:[#allocation48_spill] sm:$0xff] }
 0x131   : > { %4821 = vst [vmem:[#allocation153_spill] sm:$0xff] %v4020_v35  ;;  %4822 = vst [vmem:[#allocation154_spill] sm:$0xff] %v4023_v10  ;;  %v4047_v54 = vrot.slane %v1925_v2, %v3730_v42  ;;  %v4050_v45 = vrot.slane %v1929_v32, %v3730_v42  ;;  %v4053_v5 = vrot.slane %v1933_v3, %v3730_v42  ;;  %v4064_v2 = vsel %vm3328_vm3, 1, %v4833_v30  ;;  %v4867_v10 = vld [vmem:[#allocation68_spill] sm:$0xff] }
 0x132   : > { %4823 = vst [vmem:[#allocation155_spill] sm:$0xff] %v4026_v37  ;;  %4824 = vst [vmem:[#allocation156_spill] sm:$0xff] %v4029_v0  ;;  %v4069_v42 = vsel %vm3332_vm4, 1, %v4833_v30  ;;  %v4074_v3 = vsel %vm3336_vm5, 1, %v4833_v30  ;;  %v4079_v32 = vsel %vm3340_vm6, 1, %v4833_v30  ;;  %v4084_v29 = vsel %vm3344_vm7, 1, %v4833_v30 }
 0x133   : > { %4825 = vst [vmem:[#allocation157_spill] sm:$0xff] %v4032_v63  ;;  %4826 = vst [vmem:[#allocation158_spill] sm:$0xff] %v4035_v52  ;;  %v4098_v24 = vsel %vm3352_vm9, 1, %v4833_v30  ;;  %v4107_v28 = vsel %vm3356_vm10, 1, %v4833_v30  ;;  %v4856_v52 = vld [vmem:[#allocation57_spill] sm:$0xff]  ;;  %v4857_v63 = vld [vmem:[#allocation58_spill] sm:$0xff] }
 0x134   : > { %4827 = vst [vmem:[#allocation159_spill] sm:$0xff] %v4038_v9  ;;  %4828 = vst [vmem:[#allocation160_spill] sm:$0xff] %v4041_v53  ;;  %v4850_v53 = vld [vmem:[#allocation51_spill] sm:$0xff]  ;;  %v4853_v9 = vld [vmem:[#allocation54_spill] sm:$0xff] }
 0x135   : > { %4829 = vst [vmem:[#allocation161_spill] sm:$0xff] %v4044_v6  ;;  %4830 = vst [vmem:[#allocation162_spill] sm:$0xff] %v4047_v54  ;;  %v4848_v6 = vld [vmem:[#allocation49_spill] sm:$0xff]  ;;  %v4861_v0 = vld [vmem:[#allocation62_spill] sm:$0xff] }
 0x136   : > { %4831 = vst [vmem:[#allocation163_spill] sm:$0xff] %v4050_v45  ;;  %4832 = vst [vmem:[#allocation164_spill] sm:$0xff] %v4053_v5  ;;  %v4093_v5 = vsel %vm3348_vm8, 1, %v4833_v30  ;;  %v4842_v45 = vld [vmem:[#allocation43_spill] sm:$0xff]  ;;  %v4864_v37 = vld [vmem:[#allocation65_spill] sm:$0xff] }
 0x137   : > { %4834 = vst [vmem:[#allocation165_spill] sm:$0xff] %v4064_v2  ;;  %4835 = vst [vmem:[#allocation166_spill] sm:$0xff] %v4069_v42  ;;  %v4866_v42 = vld [vmem:[#allocation67_spill] sm:$0xff] }
 0x138   : > { %4836 = vst [vmem:[#allocation167_spill] sm:$0xff] %v4074_v3  ;;  %4837 = vst [vmem:[#allocation168_spill] sm:$0xff] %v4079_v32  ;;  %v4852_v32 = vld [vmem:[#allocation53_spill] sm:$0xff]  ;;  %v4858_v3 = vld [vmem:[#allocation59_spill] sm:$0xff] }
 0x139   : > { %4838 = vst [vmem:[#allocation169_spill] sm:$0xff] %v4084_v29  ;;  %4839 = vst [vmem:[#allocation170_spill] sm:$0xff] %v4093_v5  ;;  %v4845_v29 = vld [vmem:[#allocation46_spill] sm:$0xff]  ;;  %v4846_v5 = vld [vmem:[#allocation47_spill] sm:$0xff] }
 0x13a   : > { %4840 = vst [vmem:[#allocation171_spill] sm:$0xff] %v4098_v24  ;;  %4841 = vst [vmem:[#allocation172_spill] sm:$0xff] %v4107_v28 }
 0x150   : > { %v602_v1 = vpop.permute.xlu0 %601 }
 0x151   : > { %v756_v50 = vmul.f32 %v3442_v12, %v602_v1  ;;  %v757_v30 = vmul.f32 %v3445_v13, %v602_v1  ;;  %v758_v28 = vmul.f32 %v3448_v14, %v602_v1  ;;  %v759_v27 = vmul.f32 %v3451_v15, %v602_v1  ;;  %v4843_v12 = vld [vmem:[#allocation44_spill] sm:$0xff]  ;;  %v4844_v13 = vld [vmem:[#allocation45_spill] sm:$0xff] }
 0x152   : > { %v760_v25 = vmul.f32 %v3454_v16, %v602_v1  ;;  %v761_v49 = vmul.f32 %v3457_v17, %v602_v1  ;;  %v762_v44 = vmul.f32 %v4842_v45, %v602_v1  ;;  %v763_v40 = vmul.f32 %v4843_v12, %v602_v1 }
 0x153   : > { %v764_v23 = vmul.f32 %v4844_v13, %v602_v1  ;;  %v765_v31 = vmul.f32 %v4845_v29, %v602_v1  ;;  %v766_v54 = vmul.f32 %v4846_v5, %v602_v1  ;;  %v767_v24 = vmul.f32 %v4847_v41, %v602_v1 }
 0x154   : > { %v775_v26 = vpop.permute.xlu0 %774  ;;  %v768_v14 = vmul.f32 %v4848_v6, %v602_v1  ;;  %v769_v15 = vmul.f32 %v4849_v39, %v602_v1  ;;  %v770_v16 = vmul.f32 %v4850_v53, %v602_v1  ;;  %v771_v17 = vmul.f32 %v4851_v22, %v602_v1  ;;  %v4862_v1 = vld [vmem:[#allocation63_spill] sm:$0xff] }
 0x155   : > { %v929_v45 = vmul.f32 %v4852_v32, %v775_v26  ;;  %v930_v12 = vmul.f32 %v4853_v9, %v775_v26  ;;  %v931_v13 = vmul.f32 %v4854_v21, %v775_v26  ;;  %v932_v29 = vmul.f32 %v4855_v38, %v775_v26 }
 0x156   : > { %v933_v5 = vmul.f32 %v4856_v52, %v775_v26  ;;  %v934_v41 = vmul.f32 %v4857_v63, %v775_v26  ;;  %v935_v6 = vmul.f32 %v4858_v3, %v775_v26  ;;  %v936_v39 = vmul.f32 %v4859_v19, %v775_v26 }
 0x157   : > { %v937_v53 = vmul.f32 %v4860_v36, %v775_v26  ;;  %v938_v22 = vmul.f32 %v4861_v0, %v775_v26  ;;  %v939_v32 = vmul.f32 %v4862_v1, %v775_v26  ;;  %v940_v9 = vmul.f32 %v4863_v58, %v775_v26  ;;  %v984_v58 = vpop.permute.xlu1 %983 }
 0x158   : > { %v941_v21 = vmul.f32 %v4864_v37, %v775_v26  ;;  %v942_v38 = vmul.f32 %v4865_v43, %v775_v26  ;;  %v943_v52 = vmul.f32 %v4866_v42, %v775_v26  ;;  %v944_v63 = vmul.f32 %v4867_v10, %v775_v26  ;;  %v964_v35 = vpop.permute.xlu0 %963 }
 0x159   : > { %v945_v57 = vadd.f32 %v929_v45, %v756_v50  ;;  %v946_v3 = vadd.f32 %v930_v12, %v757_v30  ;;  %v947_v19 = vadd.f32 %v931_v13, %v758_v28  ;;  %v948_v51 = vadd.f32 %v932_v29, %v759_v27  ;;  %v4876_v45 = vld [vmem:[#allocation73_spill] sm:$0xff]  ;;  %v4877_v13 = vld [vmem:[#allocation74_spill] sm:$0xff]  ;;  %v4878_v29 = vld [vmem:[#allocation75_spill] sm:$0xff] }
 0x15a   : > { %v949_v36 = vadd.f32 %v933_v5, %v760_v25  ;;  %v950_v2 = vadd.f32 %v934_v41, %v761_v49  ;;  %v951_v0 = vadd.f32 %v935_v6, %v762_v44  ;;  %v952_v48 = vadd.f32 %v936_v39, %v763_v40  ;;  %v4879_v41 = vld [vmem:[#allocation76_spill] sm:$0xff]  ;;  %v4880_v6 = vld [vmem:[#allocation77_spill] sm:$0xff]  ;;  %v4881_v39 = vld [vmem:[#allocation78_spill] sm:$0xff] }
 0x15b   : > { %v953_v1 = vadd.f32 %v937_v53, %v764_v23  ;;  %v954_v56 = vadd.f32 %v938_v22, %v765_v31  ;;  %v955_v34 = vadd.f32 %v939_v32, %v766_v54  ;;  %v956_v37 = vadd.f32 %v940_v9, %v767_v24  ;;  %v4882_v22 = vld [vmem:[#allocation79_spill] sm:$0xff]  ;;  %v4883_v9 = vld [vmem:[#allocation80_spill] sm:$0xff] }
 0x15c   : > { %v957_v4 = vadd.f32 %v941_v21, %v768_v14  ;;  %v958_v43 = vadd.f32 %v942_v38, %v769_v15  ;;  %v959_v55 = vadd.f32 %v943_v52, %v770_v16  ;;  %v960_v42 = vadd.f32 %v944_v63, %v771_v17  ;;  %v1148_v15 = vpop.permute.xlu1 %1147  ;;  %v4874_v16 = vld [vmem:[#allocation71_spill] sm:$0xff]  ;;  %v4875_v17 = vld [vmem:[#allocation72_spill] sm:$0xff]  ;;  %v4884_v38 = vld [vmem:[#allocation81_spill] sm:$0xff] }
 0x15d   : > { %v4155_v11 = vadd.f32 %v964_v35, %v945_v57  ;;  %v4157_v50 = vadd.f32 %v964_v35, %v946_v3  ;;  %v4159_v26 = vadd.f32 %v964_v35, %v947_v19  ;;  %v4161_v27 = vadd.f32 %v964_v35, %v948_v51  ;;  %v4885_v63 = vld [vmem:[#allocation82_spill] sm:$0xff]  ;;  %v4886_v19 = vld [vmem:[#allocation83_spill] sm:$0xff] }
 0x15e   : > { %v4163_v49 = vadd.f32 %v964_v35, %v949_v36  ;;  %v4165_v40 = vadd.f32 %v964_v35, %v950_v2  ;;  %v4167_v44 = vadd.f32 %v964_v35, %v951_v0  ;;  %v4169_v23 = vadd.f32 %v964_v35, %v952_v48  ;;  %v4872_v2 = vld [vmem:[#allocation69_spill] sm:$0xff]  ;;  %v4873_v48 = vld [vmem:[#allocation70_spill] sm:$0xff]  ;;  %v4887_v0 = vld [vmem:[#allocation84_spill] sm:$0xff] }
 0x15f   : > { %v4171_v24 = vadd.f32 %v964_v35, %v953_v1  ;;  %v4173_v25 = vadd.f32 %v964_v35, %v954_v56  ;;  %v4175_v31 = vadd.f32 %v964_v35, %v955_v34  ;;  %v4177_v57 = vadd.f32 %v964_v35, %v956_v37  ;;  %v4888_v37 = vld [vmem:[#allocation85_spill] sm:$0xff] }
 0x160   : > { %v4179_v10 = vadd.f32 %v964_v35, %v957_v4  ;;  %v4181_v51 = vadd.f32 %v964_v35, %v958_v43  ;;  %v4183_v54 = vadd.f32 %v964_v35, %v959_v55  ;;  %v4185_v28 = vadd.f32 %v964_v35, %v960_v42  ;;  %v4889_v42 = vld [vmem:[#allocation86_spill] sm:$0xff]  ;;  %v1344_v62 = vpop.permute.xlu1 %1343 }
 0x161   : > { %v1130_v30 = vmul.f32 %v4872_v2, %v984_v58  ;;  %v1131_v14 = vmul.f32 %v4873_v48, %v984_v58  ;;  %v1132_v56 = vmul.f32 %v4874_v16, %v984_v58  ;;  %v1133_v34 = vmul.f32 %v4875_v17, %v984_v58  ;;  %v4890_v48 = vld [vmem:[#allocation87_spill] sm:$0xff]  ;;  %v4891_v17 = vld [vmem:[#allocation88_spill] sm:$0xff] }
 0x162   : > { %4868 = vst [vmem:[#allocation43_spill] sm:$0xff] %v4179_v10  ;;  %4869 = vst [vmem:[#allocation44_spill] sm:$0xff] %v4181_v51  ;;  %v1134_v12 = vmul.f32 %v4876_v45, %v984_v58  ;;  %v1135_v4 = vmul.f32 %v4877_v13, %v984_v58  ;;  %v1136_v5 = vmul.f32 %v4878_v29, %v984_v58  ;;  %v4892_v13 = vld [vmem:[#allocation89_spill] sm:$0xff] }
 0x163   : > { %4870 = vst [vmem:[#allocation45_spill] sm:$0xff] %v4183_v54  ;;  %4871 = vst [vmem:[#allocation46_spill] sm:$0xff] %v4185_v28  ;;  %v1137_v55 = vmul.f32 %v4879_v41, %v984_v58  ;;  %v1138_v35 = vmul.f32 %v4880_v6, %v984_v58  ;;  %v1139_v53 = vmul.f32 %v4881_v39, %v984_v58  ;;  %v4893_v41 = vld [vmem:[#allocation90_spill] sm:$0xff]  ;;  %v4894_v39 = vld [vmem:[#allocation91_spill] sm:$0xff] }
 0x164   : > { %v1140_v32 = vmul.f32 %v4882_v22, %v984_v58  ;;  %v1141_v21 = vmul.f32 %v4883_v9, %v984_v58  ;;  %v1142_v52 = vmul.f32 %v4884_v38, %v984_v58  ;;  %v1143_v3 = vmul.f32 %v4885_v63, %v984_v58  ;;  %v4895_v9 = vld [vmem:[#allocation92_spill] sm:$0xff]  ;;  %v4896_v63 = vld [vmem:[#allocation93_spill] sm:$0xff] }
 0x165   : > { %v1144_v36 = vmul.f32 %v4886_v19, %v984_v58  ;;  %v1145_v1 = vmul.f32 %v4887_v0, %v984_v58  ;;  %v1294_v43 = vmul.f32 %v4888_v37, %v1148_v15  ;;  %v1295_v2 = vmul.f32 %v4889_v42, %v1148_v15  ;;  %v4898_v0 = vld [vmem:[#allocation95_spill] sm:$0xff] }
 0x166   : > { %v1296_v16 = vmul.f32 %v4890_v48, %v1148_v15  ;;  %v1297_v45 = vmul.f32 %v4891_v17, %v1148_v15  ;;  %v1298_v29 = vmul.f32 %v4892_v13, %v1148_v15  ;;  %v1299_v6 = vmul.f32 %v4893_v41, %v1148_v15 }
 0x167   : > { %v1300_v22 = vmul.f32 %v4894_v39, %v1148_v15  ;;  %v1301_v38 = vmul.f32 %v4895_v9, %v1148_v15  ;;  %v1302_v19 = vmul.f32 %v4896_v63, %v1148_v15  ;;  %v1303_v58 = vmul.f32 %v4897_v33, %v1148_v15 }
 0x168   : > { %v1304_v37 = vmul.f32 %v4898_v0, %v1148_v15  ;;  %v1305_v42 = vmul.f32 %v4899_v18, %v1148_v15  ;;  %v1306_v48 = vmul.f32 %v4900_v47, %v1148_v15  ;;  %v1307_v17 = vmul.f32 %v4901_v8, %v1148_v15 }
 0x169   : > { %v1308_v13 = vmul.f32 %v4902_v20, %v1148_v15  ;;  %v1309_v41 = vmul.f32 %v4903_v59, %v1148_v15  ;;  %v1310_v60 = vadd.f32 %v1294_v43, %v1130_v30  ;;  %v1311_v39 = vadd.f32 %v1295_v2, %v1131_v14  ;;  %v4919_v43 = vld [vmem:[#allocation109_spill] sm:$0xff]  ;;  %v4920_v2 = vld [vmem:[#allocation110_spill] sm:$0xff] }
 0x16a   : > { %v1312_v61 = vadd.f32 %v1296_v16, %v1132_v56  ;;  %v1313_v9 = vadd.f32 %v1297_v45, %v1133_v34  ;;  %v1314_v46 = vadd.f32 %v1298_v29, %v1134_v12  ;;  %v1315_v63 = vadd.f32 %v1299_v6, %v1135_v4  ;;  %v4912_v12 = vld [vmem:[#allocation102_spill] sm:$0xff]  ;;  %v4921_v45 = vld [vmem:[#allocation111_spill] sm:$0xff]  ;;  %v4922_v6 = vld [vmem:[#allocation112_spill] sm:$0xff] }
 0x16b   : > { %v1316_v33 = vadd.f32 %v1300_v22, %v1136_v5  ;;  %v1317_v7 = vadd.f32 %v1301_v38, %v1137_v55  ;;  %v1318_v0 = vadd.f32 %v1302_v19, %v1138_v35  ;;  %v1319_v28 = vadd.f32 %v1303_v58, %v1139_v53  ;;  %v4914_v55 = vld [vmem:[#allocation104_spill] sm:$0xff]  ;;  %v4915_v53 = vld [vmem:[#allocation105_spill] sm:$0xff]  ;;  %v4924_v58 = vld [vmem:[#allocation114_spill] sm:$0xff] }
 0x16c   : > { %v1320_v18 = vadd.f32 %v1304_v37, %v1140_v32  ;;  %v1321_v54 = vadd.f32 %v1305_v42, %v1141_v21  ;;  %v1322_v47 = vadd.f32 %v1306_v48, %v1142_v52  ;;  %v1323_v51 = vadd.f32 %v1307_v17, %v1143_v3  ;;  %v4916_v32 = vld [vmem:[#allocation106_spill] sm:$0xff]  ;;  %v4917_v52 = vld [vmem:[#allocation107_spill] sm:$0xff]  ;;  %v4923_v38 = vld [vmem:[#allocation113_spill] sm:$0xff] }
 0x16d   : > { %v1324_v8 = vadd.f32 %v1308_v13, %v1144_v36  ;;  %v1325_v10 = vadd.f32 %v1309_v41, %v1145_v1  ;;  %v4220_v20 = vadd.f32 %v1310_v60, %v4155_v11  ;;  %v4223_v59 = vadd.f32 %v1311_v39, %v4157_v50  ;;  %v4918_v36 = vld [vmem:[#allocation108_spill] sm:$0xff]  ;;  %v4925_v42 = vld [vmem:[#allocation115_spill] sm:$0xff]  ;;  %v4927_v41 = vld [vmem:[#allocation117_spill] sm:$0xff] }
 0x16e   : > { %v4226_v30 = vadd.f32 %v1312_v61, %v4159_v26  ;;  %v4229_v14 = vadd.f32 %v1313_v9, %v4161_v27  ;;  %v4232_v15 = vadd.f32 %v1314_v46, %v4163_v49  ;;  %v4235_v56 = vadd.f32 %v1315_v63, %v4165_v40  ;;  %v4904_v26 = vld [vmem:[#allocation43_spill] sm:$0xff]  ;;  %v4905_v49 = vld [vmem:[#allocation44_spill] sm:$0xff]  ;;  %v4928_v9 = vld [vmem:[#allocation118_spill] sm:$0xff] }
 0x16f   : > { %v4238_v34 = vadd.f32 %v1316_v33, %v4167_v44  ;;  %v4241_v60 = vadd.f32 %v1317_v7, %v4169_v23  ;;  %v4244_v11 = vadd.f32 %v1318_v0, %v4171_v24  ;;  %v4247_v61 = vadd.f32 %v1319_v28, %v4173_v25  ;;  %v4261_v7 = vpop.permute.xlu1 %1703  ;;  %v4907_v44 = vld [vmem:[#allocation45_spill] sm:$0xff]  ;;  %v4909_v24 = vld [vmem:[#allocation46_spill] sm:$0xff]  ;;  %v4926_v17 = vld [vmem:[#allocation116_spill] sm:$0xff] }
 0x170   : > { %v4250_v50 = vadd.f32 %v1320_v18, %v4175_v31  ;;  %v4253_v46 = vadd.f32 %v1321_v54, %v4177_v57  ;;  %v4256_v27 = vadd.f32 %v1322_v47, %v4904_v26  ;;  %v4259_v40 = vadd.f32 %v1323_v51, %v4905_v49  ;;  %v4911_v28 = vld [vmem:[#allocation101_spill] sm:$0xff]  ;;  %v1508_v57 = vpop.permute.xlu0 %1507  ;;  %v4913_v54 = vld [vmem:[#allocation103_spill] sm:$0xff]  ;;  %v4930_v18 = vld [vmem:[#allocation120_spill] sm:$0xff] }
 0x171   : > { %v4264_v23 = vadd.f32 %v1324_v8, %v4907_v44  ;;  %v4267_v25 = vadd.f32 %v1325_v10, %v4909_v24  ;;  %v1490_v31 = vmul.f32 %v4911_v28, %v1344_v62  ;;  %v1491_v4 = vmul.f32 %v4912_v12, %v1344_v62  ;;  %v4929_v33 = vld [vmem:[#allocation119_spill] sm:$0xff]  ;;  %v4931_v8 = vld [vmem:[#allocation121_spill] sm:$0xff]  ;;  %v4932_v49 = vld [vmem:[#allocation122_spill] sm:$0xff] }
 0x172   : > { %4906 = vst [vmem:[#allocation47_spill] sm:$0xff] %v4259_v40  ;;  %v1492_v5 = vmul.f32 %v4913_v54, %v1344_v62  ;;  %v1493_v35 = vmul.f32 %v4914_v55, %v1344_v62  ;;  %v1494_v51 = vmul.f32 %v4915_v53, %v1344_v62  ;;  %v1495_v21 = vmul.f32 %v4916_v32, %v1344_v62  ;;  %v4933_v28 = vld [vmem:[#allocation123_spill] sm:$0xff]  ;;  %v4934_v54 = vld [vmem:[#allocation124_spill] sm:$0xff]  ;;  %v4935_v53 = vld [vmem:[#allocation125_spill] sm:$0xff] }
 0x173   : > { %4908 = vst [vmem:[#allocation48_spill] sm:$0xff] %v4264_v23  ;;  %4910 = vst [vmem:[#allocation49_spill] sm:$0xff] %v4267_v25  ;;  %v1496_v3 = vmul.f32 %v4917_v52, %v1344_v62  ;;  %v1497_v1 = vmul.f32 %v4918_v36, %v1344_v62  ;;  %v1498_v10 = vmul.f32 %v4919_v43, %v1344_v62  ;;  %v4291_v24 = vpop.permute.xlu1 %1867  ;;  %v4936_v32 = vld [vmem:[#allocation126_spill] sm:$0xff]  ;;  %v4937_v36 = vld [vmem:[#allocation127_spill] sm:$0xff] }
 0x174   : > { %v1499_v16 = vmul.f32 %v4920_v2, %v1344_v62  ;;  %v1500_v29 = vmul.f32 %v4921_v45, %v1344_v62  ;;  %v1501_v22 = vmul.f32 %v4922_v6, %v1344_v62  ;;  %v1502_v19 = vmul.f32 %v4923_v38, %v1344_v62  ;;  %v4938_v2 = vld [vmem:[#allocation128_spill] sm:$0xff]  ;;  %v4939_v6 = vld [vmem:[#allocation129_spill] sm:$0xff] }
 0x175   : > { %v1503_v37 = vmul.f32 %v4924_v58, %v1344_v62  ;;  %v1504_v48 = vmul.f32 %v4925_v42, %v1344_v62  ;;  %v1505_v13 = vmul.f32 %v4926_v17, %v1344_v62  ;;  %v1654_v39 = vmul.f32 %v4927_v41, %v1508_v57  ;;  %v4940_v58 = vld [vmem:[#allocation130_spill] sm:$0xff]  ;;  %v4941_v17 = vld [vmem:[#allocation131_spill] sm:$0xff] }
 0x176   : > { %v1655_v63 = vmul.f32 %v4928_v9, %v1508_v57  ;;  %v1656_v0 = vmul.f32 %v4929_v33, %v1508_v57  ;;  %v1657_v47 = vmul.f32 %v4930_v18, %v1508_v57  ;;  %v1658_v26 = vmul.f32 %v4931_v8, %v1508_v57  ;;  %v4942_v9 = vld [vmem:[#allocation132_spill] sm:$0xff] }
 0x177   : > { %v1659_v44 = vmul.f32 %v4932_v49, %v1508_v57  ;;  %v1660_v12 = vmul.f32 %v4933_v28, %v1508_v57  ;;  %v1661_v55 = vmul.f32 %v4934_v54, %v1508_v57  ;;  %v1662_v62 = vmul.f32 %v4935_v53, %v1508_v57  ;;  %v4943_v54 = vld [vmem:[#allocation149_spill] sm:$0xff] }
 0x178   : > { %v1663_v52 = vmul.f32 %v4936_v32, %v1508_v57  ;;  %v1664_v43 = vmul.f32 %v4937_v36, %v1508_v57  ;;  %v1665_v45 = vmul.f32 %v4938_v2, %v1508_v57  ;;  %v1666_v38 = vmul.f32 %v4939_v6, %v1508_v57  ;;  %v4944_v32 = vld [vmem:[#allocation150_spill] sm:$0xff] }
 0x179   : > { %v1667_v42 = vmul.f32 %v4940_v58, %v1508_v57  ;;  %v1668_v41 = vmul.f32 %v4941_v17, %v1508_v57  ;;  %v1669_v33 = vmul.f32 %v4942_v9, %v1508_v57  ;;  %v1670_v18 = vadd.f32 %v1654_v39, %v1490_v31  ;;  %v4945_v58 = vld [vmem:[#allocation133_spill] sm:$0xff]  ;;  %v4946_v57 = vld [vmem:[#allocation134_spill] sm:$0xff] }
 0x17a   : > { %v1671_v8 = vadd.f32 %v1655_v63, %v1491_v4  ;;  %v1672_v49 = vadd.f32 %v1656_v0, %v1492_v5  ;;  %v1673_v28 = vadd.f32 %v1657_v47, %v1493_v35  ;;  %v2014_v53 = vmul.f32 %v4943_v54, %v4291_v24  ;;  %v4947_v4 = vld [vmem:[#allocation151_spill] sm:$0xff] }
 0x17b   : > { %v2015_v36 = vmul.f32 %v4944_v32, %v4291_v24  ;;  %v1674_v25 = vadd.f32 %v1658_v26, %v1494_v51  ;;  %v1675_v2 = vadd.f32 %v1659_v44, %v1495_v21  ;;  %v1676_v23 = vadd.f32 %v1660_v12, %v1496_v3  ;;  %v4948_v47 = vld [vmem:[#allocation135_spill] sm:$0xff]  ;;  %v4949_v21 = vld [vmem:[#allocation152_spill] sm:$0xff] }
 0x17c   : > { %v1677_v6 = vadd.f32 %v1661_v55, %v1497_v1  ;;  %v1678_v40 = vadd.f32 %v1662_v62, %v1498_v10  ;;  %v1850_v17 = vmul.f32 %v4945_v58, %v4261_v7  ;;  %v1851_v31 = vmul.f32 %v4946_v57, %v4261_v7  ;;  %v4950_v62 = vld [vmem:[#allocation165_spill] sm:$0xff]  ;;  %v4963_v32 = vld [vmem:[#allocation155_spill] sm:$0xff]  ;;  %v2597_v57 = vld [vmem:[%s3217_s7] sm:$0xff] }
 0x17d   : > { %v2016_v5 = vmul.f32 %v4947_v4, %v4291_v24  ;;  %v1679_v35 = vadd.f32 %v1663_v52, %v1499_v16  ;;  %v1680_v39 = vadd.f32 %v1664_v43, %v1500_v29  ;;  %v1681_v63 = vadd.f32 %v1665_v45, %v1501_v22  ;;  %v4966_v4 = vld [vmem:[#allocation28_spill] sm:$0xff] }
 0x17e   : > { %v1682_v0 = vadd.f32 %v1666_v38, %v1502_v19  ;;  %v1852_v51 = vmul.f32 %v4948_v47, %v4261_v7  ;;  %v2017_v3 = vmul.f32 %v4949_v21, %v4291_v24  ;;  %v2030_v1 = vadd.f32 %v2014_v53, %v1850_v17  ;;  %v4954_v19 = vld [vmem:[#allocation136_spill] sm:$0xff]  ;;  %v4956_v38 = vld [vmem:[#allocation137_spill] sm:$0xff] }
 0x17f   : > { %v2031_v10 = vadd.f32 %v2015_v36, %v1851_v31  ;;  %v1683_v26 = vadd.f32 %v1667_v42, %v1503_v37  ;;  %v4317_v44 = vadd.f32 %v1668_v41, %v1504_v48  ;;  %v4319_v12 = vadd.f32 %v1669_v33, %v1505_v13  ;;  %v4955_v37 = vld [vmem:[#allocation153_spill] sm:$0xff]  ;;  %v4957_v41 = vld [vmem:[#allocation154_spill] sm:$0xff] }
 0x180   : > { %v1686_v55 = vadd.f32 %v1670_v18, %v4220_v20  ;;  %v4951_v16 = vcombine.high %v4950_v62, %v4950_v62  ;;  %v1687_v22 = vadd.f32 %v1671_v8, %v4223_v59  ;;  %v1853_v52 = vmul.f32 %v4954_v19, %v4261_v7 }
 0x181   : > { %v2018_v48 = vmul.f32 %v4955_v37, %v4291_v24  ;;  %v2032_v43 = vadd.f32 %v2016_v5, %v1852_v51  ;;  %v1688_v13 = vadd.f32 %v1672_v49, %v4226_v30  ;;  %v1689_v20 = vadd.f32 %v1673_v28, %v4229_v14  ;;  %v4958_v49 = vld [vmem:[#allocation166_spill] sm:$0xff]  ;;  %v4969_v51 = vld [vmem:[#allocation140_spill] sm:$0xff] }
 0x182   : > { %vm4325_vm11 = vcmp.ne.s32.totalorder %v4951_v16, 0  ;;  %v1690_v45 = vadd.f32 %v1674_v25, %v4232_v15  ;;  %v1854_v42 = vmul.f32 %v4956_v38, %v4261_v7  ;;  %v2019_v9 = vmul.f32 %v4957_v41, %v4291_v24  ;;  %v4962_v28 = vld [vmem:[#allocation138_spill] sm:$0xff] }
 0x183   : > { %v2033_v59 = vadd.f32 %v2017_v3, %v1853_v52  ;;  %v2046_v33 = vadd.f32 %v2030_v1, %v1686_v55  ;;  %v2047_v18 = vadd.f32 %v2031_v10, %v1687_v22  ;;  %v1691_v8 = vadd.f32 %v1675_v2, %v4235_v56  ;;  %v4970_v3 = vld [vmem:[#allocation167_spill] sm:$0xff]  ;;  %v4974_v55 = vld [vmem:[#allocation157_spill] sm:$0xff]  ;;  %v4976_v22 = vld [vmem:[#allocation142_spill] sm:$0xff] }
 0x184   : > { %v1692_v54 = vadd.f32 %v1676_v23, %v4238_v34  ;;  %v1693_v30 = vadd.f32 %v1677_v6, %v4241_v60  ;;  %v1694_v14 = vadd.f32 %v1678_v40, %v4244_v11  ;;  %v4959_v15 = vcombine.high %v4958_v49, %v4958_v49  ;;  %v4964_v11 = vld [vmem:[#allocation139_spill] sm:$0xff]  ;;  %v4965_v23 = vld [vmem:[#allocation156_spill] sm:$0xff]  ;;  %v4977_v52 = vld [vmem:[#allocation158_spill] sm:$0xff] }
 0x185   : > { %v1855_v53 = vmul.f32 %v4962_v28, %v4261_v7  ;;  %v2020_v36 = vmul.f32 %v4963_v32, %v4291_v24  ;;  %v2034_v56 = vadd.f32 %v2018_v48, %v1854_v42  ;;  %v2048_v2 = vadd.f32 %v2032_v43, %v1688_v13  ;;  %v4978_v13 = vld [vmem:[#allocation29_spill] sm:$0xff]  ;;  %v5002_v42 = vld [vmem:[#allocation31_spill] sm:$0xff]  ;;  %v5006_v10 = vld [vmem:[#allocation164_spill] sm:$0xff] }
 0x186   : > { %vm4348_vm12 = vcmp.ne.s32.totalorder %v4959_v15, 0  ;;  %v1695_v34 = vadd.f32 %v1679_v35, %v4247_v61  ;;  %v4358_v60 = vadd.f32 %v1680_v39, %v4250_v50  ;;  %v1856_v40 = vmul.f32 %v4964_v11, %v4261_v7  ;;  %v4968_v35 = vld [vmem:[#allocation47_spill] sm:$0xff]  ;;  %v4983_v49 = vld [vmem:[#allocation145_spill] sm:$0xff] }
 0x187   : > { %v2021_v6 = vmul.f32 %v4965_v23, %v4291_v24  ;;  %v2035_v58 = vadd.f32 %v2019_v9, %v1855_v53  ;;  %v2049_v17 = vadd.f32 %v2033_v59, %v1689_v20  ;;  %v2086_v31 = vsub.f32 %v2046_v33, %v2597_v57  ;;  %v4981_v9 = vld [vmem:[#allocation143_spill] sm:$0xff]  ;;  %v4982_v33 = vld [vmem:[#allocation144_spill] sm:$0xff] }
 0x188   : > { %v4967_v5 = vcombine.high %v4966_v4, %v4966_v4  ;;  %v4369_v61 = vadd.f32 %v1681_v63, %v4253_v46  ;;  %v4372_v50 = vadd.f32 %v1682_v0, %v4256_v27  ;;  %v4375_v39 = vadd.f32 %v1683_v26, %v4968_v35  ;;  %v2598_v27 = vld [vmem:[%s3217_s7 + $0x8] sm:$0xff]  ;;  %v4975_v26 = vld [vmem:[#allocation141_spill] sm:$0xff]  ;;  %v4985_v53 = vld [vmem:[#allocation168_spill] sm:$0xff] }
 0x189   : > { %v1857_v21 = vmul.f32 %v4969_v51, %v4261_v7  ;;  %v4971_v1 = vcombine.high %v4970_v3, %v4970_v3  ;;  %v2022_v46 = vmul.f32 %v4974_v55, %v4291_v24  ;;  %v2036_v63 = vadd.f32 %v2020_v36, %v1856_v40  ;;  %v4992_v35 = vld [vmem:[#allocation30_spill] sm:$0xff]  ;;  %v4994_v3 = vld [vmem:[#allocation147_spill] sm:$0xff]  ;;  %v4995_v55 = vld [vmem:[#allocation161_spill] sm:$0xff] }
 0x18a   : > { %v2087_v47 = vsub.f32 %v2047_v18, %v4967_v5  ;;  %v2050_v62 = vadd.f32 %v2034_v56, %v1690_v45  ;;  %v2088_v0 = vsub.f32 %v2048_v2, %v2598_v27  ;;  %v1858_v16 = vmul.f32 %v4975_v26, %v4261_v7  ;;  %v2599_v2 = vld [vmem:[%s3217_s7 + $0x10] sm:$0xff]  ;;  %v4997_v27 = vld [vmem:[#allocation169_spill] sm:$0xff] }
 0x18b   : > { %vm4382_vm14 = vcmp.ne.s32.totalorder %v4971_v1, 0  ;;  %v1859_v19 = vmul.f32 %v4976_v22, %v4261_v7  ;;  %v2023_v37 = vmul.f32 %v4977_v52, %v4291_v24  ;;  %v2037_v48 = vadd.f32 %v2021_v6, %v1857_v21  ;;  %v4990_v6 = vld [vmem:[#allocation146_spill] sm:$0xff]  ;;  %v2600_v22 = vld [vmem:[%s3217_s7 + $0x18] sm:$0xff] }
 0x18c   : > { %v2051_v43 = vadd.f32 %v2035_v58, %v1691_v8  ;;  %v4979_v20 = vcombine.high %v4978_v13, %v4978_v13  ;;  %v2126_v45 = vsel %vm3328_vm3, 0.0, %v2086_v31  ;;  %v2127_v41 = vsel %vm4325_vm11, 0.0, %v2087_v47  ;;  %v4984_v8 = vld [vmem:[#allocation159_spill] sm:$0xff] }
 0x18d   : > { %v1860_v59 = vmul.f32 %v4981_v9, %v4261_v7  ;;  %v1861_v18 = vmul.f32 %v4982_v33, %v4261_v7  ;;  %v1862_v15 = vmul.f32 %v4983_v49, %v4261_v7  ;;  %v2024_v28 = vmul.f32 %v4984_v8, %v4291_v24 }
 0x18e   : > { %v2089_v38 = vsub.f32 %v2049_v17, %v4979_v20  ;;  %v4986_v32 = vcombine.high %v4985_v53, %v4985_v53  ;;  %v2038_v29 = vadd.f32 %v2022_v46, %v1858_v16  ;;  %v2052_v56 = vadd.f32 %v2036_v63, %v1692_v54  ;;  %v4991_v17 = vld [vmem:[#allocation160_spill] sm:$0xff]  ;;  %v4996_v63 = vld [vmem:[#allocation162_spill] sm:$0xff] }
 0x18f   : > { %v2090_v11 = vsub.f32 %v2050_v62, %v2599_v2  ;;  %v2128_v23 = vsel %vm3332_vm4, 0.0, %v2088_v0  ;;  %v1863_v58 = vmul.f32 %v4990_v6, %v4261_v7  ;;  %v2025_v57 = vmul.f32 %v4991_v17, %v4291_v24  ;;  %v2601_v53 = vld [vmem:[%s3217_s7 + $0x20] sm:$0xff]  ;;  %v5007_v6 = vld [vmem:[#allocation32_spill] sm:$0xff] }
 0x190   : > { %vm4413_vm15 = vcmp.ne.s32.totalorder %v4986_v32, 0  ;;  %v2143_v31 = vmul.f32 %v2126_v45, %v2126_v45  ;;  %v2144_v4 = vmul.f32 %v2127_v41, %v2127_v41  ;;  %v2039_v5 = vadd.f32 %v2023_v37, %v1859_v19 }
 0x191   : > { %v2053_v47 = vadd.f32 %v2037_v48, %v1693_v30  ;;  %v4993_v51 = vcombine.high %v4992_v35, %v4992_v35  ;;  %v2129_v21 = vsel %vm4348_vm12, 0.0, %v2089_v38  ;;  %v1864_v1 = vmul.f32 %v4994_v3, %v4261_v7  ;;  %v2604_v30 = vld [vmem:[%s3217_s7 + $0x38] sm:$0xff] }
 0x192   : > { %v2026_v46 = vmul.f32 %v4995_v55, %v4291_v24  ;;  %v2027_v62 = vmul.f32 %v4996_v63, %v4291_v24  ;;  %v4998_v0 = vcombine.high %v4997_v27, %v4997_v27  ;;  %v2145_v26 = vmul.f32 %v2128_v23, %v2128_v23  ;;  %v5011_v55 = vld [vmem:[#allocation48_spill] sm:$0xff] }
 0x193   : > { %v2091_v54 = vsub.f32 %v2051_v43, %v4993_v51  ;;  %v2040_v16 = vadd.f32 %v2024_v28, %v1860_v59  ;;  %v2054_v25 = vadd.f32 %v2038_v29, %v1694_v14  ;;  %v2092_v19 = vsub.f32 %v2052_v56, %v2600_v22  ;;  %v5004_v59 = vld [vmem:[#allocation163_spill] sm:$0xff]  ;;  %v5015_v22 = vld [vmem:[#allocation170_spill] sm:$0xff] }
 0x194   : > { %vm4438_vm0 = vcmp.ne.s32.totalorder %v4998_v0, 0  ;;  %v2130_v37 = vsel %vm3336_vm5, 0.0, %v2090_v11  ;;  %v2041_v48 = vadd.f32 %v2025_v57, %v1861_v18  ;;  %v2146_v43 = vmul.f32 %v2129_v21, %v2129_v21  ;;  %v2602_v51 = vld [vmem:[%s3217_s7 + $0x28] sm:$0xff] }
 0x195   : > { %v2160_v13 = vsel %vm2159_vm13, %v2143_v31, 0.0  ;;  %v2161_v20 = vsel %vm2159_vm13, %v2144_v4, 0.0  ;;  %v2055_v38 = vadd.f32 %v2039_v5, %v1695_v34  ;;  %v5003_v45 = vcombine.high %v5002_v42, %v5002_v42  ;;  %v5009_v4 = vld [vmem:[#allocation148_spill] sm:$0xff] }
 0x196   : > { %v2131_v14 = vsel %vm4382_vm14, 0.0, %v2091_v54  ;;  %v2162_v9 = vadd.f32 %v2161_v20, %v2160_v13  ;;  %v2028_v33 = vmul.f32 %v5004_v59, %v4291_v24  ;;  %v2042_v49 = vadd.f32 %v2026_v46, %v1862_v15 }
 0x197   : > { %v2093_v41 = vsub.f32 %v2053_v47, %v5003_v45  ;;  %v2147_v8 = vmul.f32 %v2130_v37, %v2130_v37  ;;  %v2163_v18 = vsel %vm2159_vm13, %v2145_v26, 0.0  ;;  %v2056_v28 = vadd.f32 %v2040_v16, %v4358_v60  ;;  %v5014_v16 = vld [vmem:[#allocation49_spill] sm:$0xff] }
 0x198   : > { %v2094_v32 = vsub.f32 %v2054_v25, %v2601_v53  ;;  %v2132_v29 = vsel %vm3340_vm6, 0.0, %v2092_v19  ;;  %v2164_v56 = vadd.f32 %v2163_v18, %v2162_v9  ;;  %v2029_v2 = vmul.f32 %v5006_v10, %v4291_v24  ;;  %v5021_v18 = vld [vmem:[#allocation171_spill] sm:$0xff] }
 0x199   : > { %v2043_v11 = vadd.f32 %v2027_v62, %v1863_v58  ;;  %v2148_v40 = vmul.f32 %v2131_v14, %v2131_v14  ;;  %v2165_v23 = vsel %vm2159_vm13, %v2146_v43, 0.0  ;;  %v2057_v15 = vadd.f32 %v2041_v48, %v4369_v61  ;;  %v5012_v62 = vld [vmem:[#allocation33_spill] sm:$0xff] }
 0x19a   : > { %v5008_v17 = vcombine.high %v5007_v6, %v5007_v6  ;;  %v2133_v57 = vsel %vm4413_vm15, 0.0, %v2093_v41  ;;  %v2166_v31 = vadd.f32 %v2165_v23, %v2164_v56  ;;  %v1865_v5 = vmul.f32 %v5009_v4, %v4261_v7  ;;  %v5018_v41 = vld [vmem:[#allocation34_spill] sm:$0xff] }
 0x19b   : > { %v2044_v47 = vadd.f32 %v2028_v33, %v1864_v1  ;;  %v2149_v35 = vmul.f32 %v2132_v29, %v2132_v29  ;;  %v2167_v24 = vsel %vm2159_vm13, %v2147_v8, 0.0  ;;  %v2058_v58 = vadd.f32 %v2042_v49, %v4372_v50  ;;  %v5020_v49 = vld [vmem:[#allocation172_spill] sm:$0xff] }
 0x19c   : > { %v2095_v60 = vsub.f32 %v2055_v38, %v5008_v17  ;;  %v2096_v54 = vsub.f32 %v2056_v28, %v2602_v51  ;;  %v2134_v21 = vsel %vm3344_vm7, 0.0, %v2094_v32  ;;  %v2168_v3 = vadd.f32 %v2167_v24, %v2166_v31 }
 0x19d   : > { %v1700_v36 = vadd.f32 %v4317_v44, %v5011_v55  ;;  %v2045_v46 = vadd.f32 %v2029_v2, %v1865_v5  ;;  %v2150_v63 = vmul.f32 %v2133_v57, %v2133_v57  ;;  %v2169_v7 = vsel %vm2159_vm13, %v2148_v40, 0.0 }
 0x19e   : > { %v2059_v1 = vadd.f32 %v2043_v11, %v4375_v39  ;;  %v5013_v50 = vcombine.high %v5012_v62, %v5012_v62  ;;  %v2135_v0 = vsel %vm4438_vm0, 0.0, %v2095_v60  ;;  %v2170_v26 = vadd.f32 %v2169_v7, %v2168_v3  ;;  %v2603_v39 = vld [vmem:[%s3217_s7 + $0x30] sm:$0xff]  ;;  %s2201_s7 = sld [smem:[#allocation3 + %s2200_s2]] (!%p2443_p0) }
 0x19f   : > { %v1701_v25 = vadd.f32 %v4319_v12, %v5014_v16  ;;  %v5016_v44 = vcombine.high %v5015_v22, %v5015_v22  ;;  %v2151_v19 = vmul.f32 %v2134_v21, %v2134_v21  ;;  %v2171_v52 = vsel %vm2159_vm13, %v2149_v35, 0.0 }
 0x1a0   : > { %v2097_v27 = vsub.f32 %v2057_v15, %v5013_v50  ;;  %v2060_v37 = vadd.f32 %v2044_v47, %v1700_v36  ;;  %v2098_v48 = vsub.f32 %v2058_v58, %v2603_v39  ;;  %v2136_v13 = vsel %vm3348_vm8, 0.0, %v2096_v54 }
 0x1a1   : > { %vm2123_vm1 = vcmp.ne.s32.totalorder %v5016_v44, 0  ;;  %v2172_v20 = vadd.f32 %v2171_v52, %v2170_v26  ;;  %v2077_v38 = vcombine.high %v2604_v30, %v2604_v30  ;;  %v2152_v42 = vmul.f32 %v2135_v0, %v2135_v0 }
 0x1a2   : > { %v2173_v45 = vsel %vm2159_vm13, %v2150_v63, 0.0  ;;  %v2061_v12 = vadd.f32 %v2045_v46, %v1701_v25  ;;  %v5019_v14 = vcombine.high %v5018_v41, %v5018_v41  ;;  %v2137_v59 = vsel %vm2123_vm1, 0.0, %v2097_v27  ;;  %v2142_v63 = vld [vmem:[#allocation2] sm:$0xf] }
 0x1a3   : > { %v2174_v33 = vadd.f32 %v2173_v45, %v2172_v20  ;;  %v2117_v8 = vcombine.high %v5020_v49, %v5020_v49  ;;  %v5022_v28 = vcombine.high %v5021_v18, %v5021_v18  ;;  %v2153_v53 = vmul.f32 %v2136_v13, %v2136_v13 }
 0x1a4   : > { %v2099_v9 = vsub.f32 %v2059_v1, %v5019_v14  ;;  %v2175_v32 = vsel %vm2159_vm13, %v2151_v19, 0.0  ;;  %v2100_v34 = vsub.f32 %v2060_v37, %v2604_v30  ;;  %v2138_v56 = vsel %vm3352_vm9, 0.0, %v2098_v48 }
 0x1a5   : > { %vm2124_vm2 = vcmp.ne.s32.totalorder %v5022_v28, 0  ;;  %v2176_v10 = vadd.f32 %v2175_v32, %v2174_v33  ;;  %v2154_v2 = vmul.f32 %v2137_v59, %v2137_v59  ;;  %v2177_v11 = vsel %vm2159_vm13, %v2152_v42, 0.0 }
 0x1a6   : > { %v2101_v40 = vsub.f32 %v2061_v12, %v2077_v38  ;;  %v2139_v23 = vsel %vm2124_vm2, 0.0, %v2099_v9  ;;  %vm2125_vm3 = vcmp.ne.s32.totalorder %v2117_v8, 0  ;;  %v2155_v6 = vmul.f32 %v2138_v56, %v2138_v56 }
 0x1a7   : > { %v2178_v15 = vadd.f32 %v2177_v11, %v2176_v10  ;;  %v2179_v17 = vsel %vm2159_vm13, %v2153_v53, 0.0  ;;  %v2140_v57 = vsel %vm3356_vm10, 0.0, %v2100_v34  ;;  %v2156_v4 = vmul.f32 %v2139_v23, %v2139_v23 }
 0x1a8   : > { %v2181_v5 = vsel %vm2159_vm13, %v2154_v2, 0.0  ;;  %v2141_v47 = vsel %vm2125_vm3, 0.0, %v2101_v40  ;;  %v2157_v24 = vmul.f32 %v2140_v57, %v2140_v57  ;;  %v2183_v58 = vsel %vm2159_vm13, %v2155_v6, 0.0 }
 0x1a9   : > { %v2180_v31 = vadd.f32 %v2179_v17, %v2178_v15  ;;  %v2158_v54 = vmul.f32 %v2141_v47, %v2141_v47  ;;  %v2185_v61 = vsel %vm2159_vm13, %v2156_v4, 0.0  ;;  %vm2194_vm4 = vcmask 3072  }
 0x1aa   : > { %v2187_v3 = vsel %vm2159_vm13, %v2157_v24, 0.0 }
 0x1ab   : > { %v2182_v35 = vadd.f32 %v2181_v5, %v2180_v31  ;;  %v2189_v36 = vsel %vm2159_vm13, %v2158_v54, 0.0 }
 0x1ad   : > { %v2184_v51 = vadd.f32 %v2183_v58, %v2182_v35 }
 0x1af   : > { %v2186_v21 = vadd.f32 %v2185_v61, %v2184_v51 }
 0x1b1   : > { %v2188_v55 = vadd.f32 %v2187_v3, %v2186_v21 }
 0x1b3   : > { %v2190_v46 = vadd.f32 %v2189_v36, %v2188_v55 }
 0x1b5   : > { %2191 = vadd.xlane.f32.xlu0 %v2190_v46 }
 0x23f   : > { %2199 = sbr.rel (%p2443_p0) target bundleno = 798 (0x31e), region = 80 }
 0x242   : > { %v2192_v7 = vpop.xlane.xlu0 %2191 }
 0x243   : > { %v2193_v1 = vadd.f32 %v2192_v7, %v2142_v63 }
 0x245   : > { %2195 = vst.msk [vmem:[#allocation2] sm:$0xf] %vm2194_vm4, %v2193_v1 }
 0x24c   : > { %v2202_v62 = vld [vmem:[#allocation2] sm:$0xf] }
 0x24d   : > { %v2203_v50 = vsel %vm2194_vm4, %v2202_v62, 0.0 }
 0x24e   : > { %2204 = vadd.xlane.f32.xlu0 %v2203_v50 }
 0x2db   : > { %v2205_v27 = vpop.xlane.xlu0 %2204 }
 0x2dc   : > { %v2206_v0 = vrot.slane %v2205_v27, 4 }
 0x2de   : > { %v2207_v26 = vadd.f32 %v2206_v0, %v2205_v27 }
 0x2e0   : > { %v2208_v16 = vrot.slane %v2207_v26, 2 }
 0x2e2   : > { %v2209_v25 = vadd.f32 %v2208_v16, %v2207_v26 }
 0x2e4   : > { %v2210_v22 = vrot.slane %v2209_v25, 1 }
 0x2e6   : > { %v2211_v44 = vadd.f32 %v2210_v22, %v2209_v25 }
 0x2e8   : > { %2448 = vpush %v2211_v44 }
 0x319   : > { %s2449_s24 = spop %2448 }
 0x31a   : > { %s2213_s21 = smul.f32 %s2449_s24, %s2201_s7 }
 0x31c   : > { %v2214_v19 = vstv %s2213_s21 }
 0x31d   : > { %2215 = vst [vmem:[%s487_s18] sm:$0xff] %v2214_v19 }
 0x31e PF: > { %s2445_s11 = sshll.u32 %s2862_s12, 7  ;;  %s5025_s14 = sld [smem:[#allocation177_spill]] }
 0x31f   : > { %s2230_s10 = sshll.u32 %s487_s18, 4  ;;  %s2217_s26 = scalar_lea.sflag [#allocation5], %s485_s25  ;;  %s2231_s10 = int_to_ptr.vmem [resolvable:$true] %s2230_s10 }
 0x320   : > { %s2740_s23 = scalar_lea.vmem %s2231_s10, 128  ;;  %p5027_p6 = scmp.ne.s32.totalorder %s4664_s6, 0 }
 0x321   : > { %p2741_p2 = scmp.ne.s32.totalorder %s2231_s10, %s2740_s23  ;;  %s2886_s30 = smov [#allocation13]  }
 0x322   : > { %s2744_s0 = sshll.u32 %s2886_s30, 4  ;;  %s2745_s0 = int_to_ptr.vmem [resolvable:$false] %s2744_s0 }
 0x323   : > { %p2742_p7 = pnand %p2741_p2, %p5027_p6  ;;  %s2746_s22 = scalar_lea.vmem %s2745_s0, 256 }
 0x324   : > { %s5026_s19 = smov %s5025_s14  ;;  %s4523_s13 = scalar_lea.hbm %s5025_s14, %s2445_s11 }
 0x325   : > { %p2743_p8 = pneg %p2742_p7  ;;  %p2747_p5 = scmp.lt.s32.totalorder %s2231_s10, %s2745_s0 }
 0x326   : > { %p2748_p1 = scmp.lt.s32.totalorder %s2746_s22, %s2740_s23 }
 0x328   : > { %p2749_p11 = por %p2748_p1, %p2747_p5 }
 0x32a   : > { %p2750_p13 = pnand %p2749_p11, %p2743_p8 }
 0x32c   : > { %2753 = shalt.err (!%p2750_p13)
}
 0x32d   : > { %s2754_s12 = scalar_lea.hbm %s4523_s13, 128  ;;  %s2758_s18 = scalar_lea.hbm %s5026_s19, 256 }
 0x32e   : > { %p2755_p3 = scmp.ne.s32.totalorder %s4523_s13, %s2754_s12  ;;  %p2759_p4 = scmp.lt.u32.totalorder %s4523_s13, %s5026_s19 }
 0x32f   : > { %p2760_p12 = scmp.lt.u32.totalorder %s2758_s18, %s2754_s12  ;;  %p2762_p2 = scmp.lt.u32.totalorder %s2754_s12, %s4523_s13 }
 0x330   : > { %p2756_p10 = pnand %p2755_p3, %p5027_p6 }
 0x331   : > { %p2761_p0 = por %p2760_p12, %p2759_p4 }
 0x332   : > { %p2757_p9 = pneg %p2756_p10 }
 0x333   : > { %p2763_p7 = por %p2762_p2, %p2761_p0 }
 0x335   : > { %p2764_p8 = pnand %p2763_p7, %p2757_p9 }
 0x337   : > { %2767 = shalt.err (!%p2764_p8)
}
 0x338   : > { %2462 = dma.vmem_to_hbm [thread:$0]  (%p5027_p6), %s2231_s10, 128, %s4523_s13, %s2217_s26  }
 0x339 PF: > { %s5028_s2 = sld [smem:[#allocation27_spill]]  ;;  %p2488_p5 = scmp.ge.s32.totalorder %s2874_s15, 2 }
 0x33a   : > { %s2242_s7 = sand.u32 1, %s2834_s27  }
 0x33b   : > { %s2243_s24 = scalar_lea.sflag [#allocation5], %s2242_s7 }
 0x33f   : > { %p5029_p1 = scmp.ne.s32.totalorder %s5028_s2, 0 }
 0x341   : > { %p2482_p11 = pnand %p2488_p5, %p5029_p1 }
 0x343   : > { %2829 = dma.done.wait (!%p2482_p11), %s2243_s24, 128  }
 0x344   : > { %2831 = vsyncadd (!%p2482_p11), %s2243_s24, 4294967168  ;;  %s31_s15 = sadd.s32 1, %s2874_s15   ;;  %s5030_s21 = sld [smem:[#allocation19_spill]] }
 0x345   : > { %p28_p13 = scmp.ge.s32.totalorder %s31_s15, 6   ;;  %s5031_s29 = sld [smem:[#allocation26_spill]] }
 0x346   : > { %s5032_s6 = sld [smem:[#allocation20_spill]]  ;;  %s5033_s10 = sld [smem:[#allocation25_spill]] }
 0x347   : > { %s5034_s11 = sld [smem:[#allocation21_spill]]  ;;  %s5035_s12 = sld [smem:[#allocation22_spill]] }
 0x348   : > { %s5036_s13 = sld [smem:[#allocation23_spill]]  ;;  %s5037_s14 = sld [smem:[#allocation24_spill]] }
 0x349   : > { %s5038_s27 = smov %s2838_s28  ;;  %s5040_s30 = smov %s2850_s9 }
 0x34a   : > { %s5039_s28 = smov %s5030_s21  ;;  %30 = sbr.rel (!%p28_p13) target bundleno = 20 (0x14), region = 150 }
 0x34c   : > { %s5041_s9 = smov %s5032_s6 }
 0x351   :  { %2248 = vsyncpa [#allocation4], 1 }
 0x352   :  { %2250 = vsyncpa [#allocation4 + $0x1], 1 }
 0x353   :  { %2251 = vsyncpa [#allocation9], 1 }
 0x354   :  { %2253 = vsyncpa [#allocation9 + $0x1], 1 }
 0x355   :  { %2254 = vsyncpa [#allocation12], 1 }
 0x356   :  { %2256 = vsyncpa [#allocation12 + $0x1], 1 }
 0x357   :  { %2257 = vsyncpa [#allocation5], 1 }
 0x358   :  { %2259 = vsyncpa [#allocation5 + $0x1], 1 }
 0x359   :  { %2260 = vsyncpa [#allocation6], 1 }
 0x35a   :  { %2262 = vsyncpa [#allocation6 + $0x1], 1 }

</bundles_post_ra>
